<compile_context>
chip_gen: v7x
topology: tpu7x:2x2x1
jax: 0.10.0
libtpu: 0.0.40
codegen_flags: <defaults>
</compile_context>

<pallas_src>
import functools

import jax
import jax.numpy as jnp
import numpy as np
from jax import lax
from jax.experimental import pallas as pl
from jax.experimental.pallas import tpu as pltpu

_MASK_VALUE = -1e30


def _query_vmem_capacity():
    try:
        return int(pltpu.get_tpu_info().vmem_capacity_bytes)
    except Exception:
        return None


_VMEM_CAP = _query_vmem_capacity()
if _VMEM_CAP is None:
    _VMEM_LIMIT = 64 * 1024 * 1024          # conservative fallback (e.g. interpret mode)
    _DEFAULT_KV_TILE = 256
else:
    # ~108 MiB on v5e/v6e (128 MiB physical), ~54 MiB on v7x (64 MiB physical).
    _VMEM_LIMIT = min(int(_VMEM_CAP * 0.85), 112 * 1024 * 1024)
    _DEFAULT_KV_TILE = 512 if _VMEM_CAP >= 96 * 1024 * 1024 else 256


def _tile(n, preferred, granule=128):
    """Largest tile <= preferred dividing n, preferring multiples of `granule`."""
    if n <= preferred:
        return n
    start = preferred - (preferred % granule)
    for t in range(start, 0, -granule):
        if t > 0 and n % t == 0:
            return t
    for t in range(preferred, 0, -1):
        if n % t == 0:
            return t
    return n


# ---------------------------------------------------------------------------
# Linear projection kernel: y[i, j] = x[i, :] @ W[:, j] (+ bias[j])
# x is (rows, D) (batch collapsed into rows); grid is (col_blocks, row_blocks)
# so the weight tile stays VMEM-resident across consecutive row steps.
# ---------------------------------------------------------------------------
def _linear_kernel(*refs, has_bias):
    if has_bias:
        x_ref, w_ref, b_ref, o_ref = refs
    else:
        x_ref, w_ref, o_ref = refs
    x = x_ref[...].astype(w_ref.dtype)                   # cast in-kernel (no XLA round trip)
    y = jnp.dot(x, w_ref[...], preferred_element_type=jnp.float32)
    if has_bias:
        y = y + b_ref[...].astype(jnp.float32)           # (1, tc) broadcasts
    o_ref[...] = y.astype(o_ref.dtype)


def _linear(x, w, b=None, *, out_dtype=None, row_tile=512, col_tile=512):
    B, N, D = x.shape
    Dw, F = w.shape
    assert Dw == D
    out_dtype = x.dtype if out_dtype is None else out_dtype

    x2 = x.reshape(B * N, D)                              # contiguous, free reshape
    BN = B * N
    tr = _tile(BN, row_tile)
    tc = _tile(F, col_tile)

    in_specs = [
        pl.BlockSpec((tr, D), lambda j, i: (i, 0)),       # rows vary fastest
        pl.BlockSpec((D, tc), lambda j, i: (0, j)),       # weight tile resident across i
    ]
    args = [x2, w]
    if b is not None:
        in_specs.append(pl.BlockSpec((1, tc), lambda j, i: (0, j)))
        args.append(b.reshape(1, F))

    kernel = functools.partial(_linear_kernel, has_bias=b is not None)
    out = pl.pallas_call(
        kernel,
        out_shape=jax.ShapeDtypeStruct((BN, F), out_dtype),
        grid_spec=pltpu.PrefetchScalarGridSpec(
            num_scalar_prefetch=0,
            grid=(F // tc, BN // tr),
            in_specs=in_specs,
            out_specs=pl.BlockSpec((tr, tc), lambda j, i: (i, j)),
        ),
        compiler_params=pltpu.CompilerParams(
            dimension_semantics=("parallel", "parallel"),
            vmem_limit_bytes=_VMEM_LIMIT),
    )(*args)
    return out.reshape(B, N, F)


# ---------------------------------------------------------------------------
# Head-batched flash attention kernel (online softmax over kv tiles).
# Inputs are (B*heads, N, dh); the output is written lane-dense as (B, Nq, heads*dh)
# (head merge folded into the finalize).  q must already carry the dh**-0.5 scale.
# ---------------------------------------------------------------------------
def _flash_attention_kernel(*refs, causal, has_mask, nq, nk, bf16_exp):
    if has_mask:
        q_ref, k_ref, v_ref, mask_ref, o_ref, m_sc, l_sc, acc_sc = refs
    else:
        q_ref, k_ref, v_ref, o_ref, m_sc, l_sc, acc_sc = refs
        mask_ref = None

    qi = pl.program_id(1)
    kv_idx = pl.program_id(2)
    heads, tq, dh = q_ref.shape
    tk = k_ref.shape[1]

    @pl.when(kv_idx == 0)
    def _init():
        m_sc[...] = jnp.full_like(m_sc, -jnp.inf)
        l_sc[...] = jnp.zeros_like(l_sc)
        acc_sc[...] = jnp.zeros_like(acc_sc)

    def _update():
        q = q_ref[...]                                    # pre-scaled via wq
        k = k_ref[...]
        v = v_ref[...]
        # All heads in one batched matmul, f32 accumulation on the MXU.
        s = jnp.einsum("hqd,hkd->hqk", q, k, preferred_element_type=jnp.float32)

        if causal:
            # Only the diagonal-crossing tile needs the iota mask; fully-allowed interior
            # tiles skip the mask VPU work entirely.
            needs_mask = (kv_idx * tk + (tk - 1)) > (qi * tq + (nk - nq))

            def _apply_mask(sv):
                q_ids = qi * tq + lax.broadcasted_iota(jnp.int32, (tq, tk), 0)
                k_ids = kv_idx * tk + lax.broadcasted_iota(jnp.int32, (tq, tk), 1)
                allowed = k_ids <= q_ids + (nk - nq)      # matches torch left-padded causal mask
                return jnp.where(allowed[None, :, :], sv, _MASK_VALUE)

            s = lax.cond(needs_mask, _apply_mask, lambda sv: sv, s)

        if has_mask:
            keep = mask_ref[...] != 0                     # (1, 1, tk) broadcasts over heads/q
            s = jnp.where(keep, s, _MASK_VALUE)

        m_prev = m_sc[...]
        m_new = jnp.maximum(m_prev, jnp.max(s, axis=-1, keepdims=True))
        alpha = jnp.exp(m_prev - m_new)
        if bf16_exp:
            # bf16 EUP exp on v6e/v7x; softmax statistics stay in f32.
            p = jnp.exp((s - m_new).astype(jnp.bfloat16))
            p_sum = jnp.sum(p.astype(jnp.float32), axis=-1, keepdims=True)
            pv = p
        else:
            p = jnp.exp(s - m_new)
            p_sum = jnp.sum(p, axis=-1, keepdims=True)
            pv = p.astype(v.dtype)
        l_sc[...] = alpha * l_sc[...] + p_sum
        acc_sc[...] = alpha * acc_sc[...] + jnp.einsum(
            "hqk,hkd->hqd", pv, v, preferred_element_type=jnp.float32)
        m_sc[...] = m_new

    if causal:
        # Skip kv tiles that are entirely above the causal diagonal (~2x for causal).
        has_work = kv_idx * tk <= qi * tq + (tq - 1) + (nk - nq)
        pl.when(has_work)(_update)
    else:
        _update()

    @pl.when(kv_idx == pl.num_programs(2) - 1)
    def _finalize():
        l = l_sc[...]
        if o_ref.dtype == jnp.float32:
            inv_l = 1.0 / l                               # exact for the f32 path
        else:
            inv_l = pl.reciprocal(l, approx=True)         # EUP slot, otherwise idle
        out = acc_sc[...] * inv_l                         # (heads, tq, dh) f32
        # Fold the head merge in here: lane-dense (tq, heads*dh) store (>=128 lanes).
        out = jnp.concatenate([out[h] for h in range(heads)], axis=-1)
        o_ref[0] = out.astype(o_ref.dtype)


def _flash_attention(q, k, v, mask, *, heads, causal, out_dtype,
                     q_tile=256, kv_tile=None):
    BH, Nq, dh = q.shape
    _, Nk, _ = k.shape
    B = BH // heads
    inner = heads * dh
    if kv_tile is None:
        kv_tile = _DEFAULT_KV_TILE
    tq = _tile(Nq, q_tile)
    tk = _tile(Nk, kv_tile)

    in_specs = [
        pl.BlockSpec((heads, tq, dh), lambda b, qi, ki: (b, qi, 0)),
        pl.BlockSpec((heads, tk, dh), lambda b, qi, ki: (b, ki, 0)),
        pl.BlockSpec((heads, tk, dh), lambda b, qi, ki: (b, ki, 0)),
    ]
    args = [q, k, v]
    if mask is not None:
        in_specs.append(pl.BlockSpec((1, 1, tk), lambda b, qi, ki: (b, 0, ki)))
        args.append(mask)

    kernel = functools.partial(
        _flash_attention_kernel, causal=causal, has_mask=mask is not None,
        nq=Nq, nk=Nk, bf16_exp=(q.dtype == jnp.bfloat16))

    return pl.pallas_call(
        kernel,
        out_shape=jax.ShapeDtypeStruct((B, Nq, inner), out_dtype),
        grid_spec=pltpu.PrefetchScalarGridSpec(
            num_scalar_prefetch=0,
            grid=(B, Nq // tq, Nk // tk),
            in_specs=in_specs,
            out_specs=pl.BlockSpec((1, tq, inner), lambda b, qi, ki: (b, qi, 0)),
            scratch_shapes=[pltpu.VMEM((heads, tq, 1), jnp.float32),   # running max
                            pltpu.VMEM((heads, tq, 1), jnp.float32),   # running denom
                            pltpu.VMEM((heads, tq, dh), jnp.float32)], # f32 accumulator
        ),
        compiler_params=pltpu.CompilerParams(
            dimension_semantics=("parallel", "parallel", "arbitrary"),
            vmem_limit_bytes=_VMEM_LIMIT),
    )(*args)


# ---------------------------------------------------------------------------
# Parameter prep (once per model / dtype, NOT per forward call):
#   * scale = dim_head**-0.5 folded into wq
#   * wq|wk|wv and wk|wv concatenated and cast to the compute dtype
# ---------------------------------------------------------------------------
def prepare_cross_attention_params(params, compute_dtype=jnp.bfloat16):
    heads = params["heads"]
    dh = params["dim_head"]
    scale = dh ** (-0.5)
    wq_scaled = params["wq"] * scale
    return {
        "heads": heads,
        "dim_head": dh,
        "compute_dtype": compute_dtype,
        "w_qkv": jnp.concatenate(
            [wq_scaled, params["wk"], params["wv"]], axis=1).astype(compute_dtype),
        "wq": wq_scaled.astype(compute_dtype),
        "w_kv": jnp.concatenate(
            [params["wk"], params["wv"]], axis=1).astype(compute_dtype),
        "wo": params["wo"].astype(compute_dtype),
        "bo": params["bo"].astype(jnp.float32),
    }


def _split_heads(t, heads):
    B, N, HD = t.shape
    dh = HD // heads
    return t.reshape(B, N, heads, dh).transpose(0, 2, 1, 3).reshape(B * heads, N, dh)


def cross_attention(prep, x, context=None, mask=None, *, causal=False):
    heads = prep["heads"]
    dh = prep["dim_head"]
    inner = heads * dh
    cdt = prep["compute_dtype"]
    B = x.shape[0]

    if context is None:
        # self-attention: fused QKV projection, one (D, 3*inner) matmul
        qkv = _linear(x, prep["w_qkv"], out_dtype=cdt)
        q = qkv[..., :inner]
        k = qkv[..., inner:2 * inner]
        v = qkv[..., 2 * inner:]
    else:
        q = _linear(x, prep["wq"], out_dtype=cdt)
        kv = _linear(context, prep["w_kv"], out_dtype=cdt)
        k = kv[..., :inner]
        v = kv[..., inner:]

    qh = _split_heads(q, heads)
    kh = _split_heads(k, heads)
    vh = _split_heads(v, heads)

    mask_i = None
    if mask is not None:
        # torch: rearrange(mask, 'b ... -> b (...)'), broadcast over heads/queries
        mask_i = mask.reshape(B, 1, -1).astype(jnp.int32)

    # (B, Nq, inner) lane-dense output, head merge done inside the kernel.
    o = _flash_attention(qh, kh, vh, mask_i, heads=heads, causal=causal, out_dtype=cdt)

    # to_out = Linear(inner, query_dim) followed by Dropout(p=0.0) -> no-op.
    return _linear(o, prep["wo"], prep["bo"], out_dtype=x.dtype)


# ---------------------------------------------------------------------------
# Pure-JAX reference (mirrors the PyTorch module, f32)
# ---------------------------------------------------------------------------
def cross_attention_reference(params, x, context=None, mask=None, *, causal=False):
    heads = params["heads"]
    dh = params["dim_head"]
    scale = dh ** (-0.5)
    ctx = x if context is None else context
    q = x @ params["wq"]
    k = ctx @ params["wk"]
    v = ctx @ params["wv"]
    B, nq, _ = q.shape
    nk = k.shape[1]

    def split(t):
        return t.reshape(t.shape[0], t.shape[1], heads, dh).transpose(0, 2, 1, 3)

    qh, kh, vh = split(q), split(k), split(v)
    sim = jnp.einsum("bhid,bhjd->bhij", qh, kh) * scale
    neg = -jnp.finfo(sim.dtype).max
    if mask is not None:
        sim = jnp.where(mask.reshape(B, 1, 1, nk), sim, neg)
    if causal:
        i = jnp.arange(nq)[:, None]
        j = jnp.arange(nk)[None, :]
        causal_mask = i < (j - (nk - nq))               # True where masked
        sim = jnp.where(causal_mask[None, None], neg, sim)
    attn = jax.nn.softmax(sim, axis=-1)
    out = jnp.einsum("bhij,bhjd->bhid", attn, vh)
    out = out.transpose(0, 2, 1, 3).reshape(B, nq, heads * dh)
    return out @ params["wo"] + params["bo"]


def init_cross_attention_params(key, query_dim, context_dim=None, heads=8, dim_head=64):
    context_dim = query_dim if context_dim is None else context_dim
    inner = heads * dim_head
    ks = jax.random.split(key, 5)

    def w(k_, shape):
        return (0.05 * jax.random.normal(k_, shape)).astype(jnp.float32)

    return {
        "heads": heads,
        "dim_head": dim_head,
        # nn.Linear weights stored pre-transposed as (in, out)
        "wq": w(ks[0], (query_dim, inner)),       # to_q (bias=False)
        "wk": w(ks[1], (context_dim, inner)),     # to_k (bias=False)
        "wv": w(ks[2], (context_dim, inner)),     # to_v (bias=False)
        "wo": w(ks[3], (inner, query_dim)),       # to_out[0] weight
        "bo": (0.05 * jax.random.normal(ks[4], (query_dim,))).astype(jnp.float32),
    }


if __name__ == "__main__":
    root = jax.random.PRNGKey(0)
    k_param, k_x, k_ctx = jax.random.split(root, 3)

    B, NQ, D = 2, 256, 128
    HEADS, DIM_HEAD = 4, 64                        # inner_dim = 256
    NK_CROSS = 128

    params = init_cross_attention_params(k_param, query_dim=D, context_dim=D,
                                         heads=HEADS, dim_head=DIM_HEAD)
    x = jax.random.normal(k_x, (B, NQ, D), dtype=jnp.float32)

    # Weights concatenated / cast / scale-folded once (not per forward call).
    prep_bf16 = prepare_cross_attention_params(params, jnp.bfloat16)
    prep_f32 = prepare_cross_attention_params(params, jnp.float32)

    # 1) self-attention, bf16 matmuls (main performance configuration)
    out = cross_attention(prep_bf16, x)
    jax.block_until_ready(out)
    assert out.shape == (B, NQ, D), out.shape
    assert bool(jnp.all(jnp.isfinite(out)))
    ref = cross_attention_reference(params, x)
    np.testing.assert_allclose(np.asarray(out), np.asarray(ref), rtol=1e-1, atol=1e-2)

    # 2) causal self-attention, f32 matmuls (structure check)
    out_c = cross_attention(prep_f32, x, causal=True)
    ref_c = cross_attention_reference(params, x, causal=True)
    np.testing.assert_allclose(np.asarray(out_c), np.asarray(ref_c), rtol=2e-2, atol=2e-3)

    # 3) cross-attention with a key-padding mask, f32 matmuls
    ctx = jax.random.normal(k_ctx, (B, NK_CROSS, D), dtype=jnp.float32)
    lengths = jnp.array([NK_CROSS, NK_CROSS - 32])
    mask = jnp.arange(NK_CROSS)[None, :] < lengths[:, None]        # (B, NK) bool
    out_x = cross_attention(prep_f32, x, context=ctx, mask=mask)
    ref_x = cross_attention_reference(params, x, context=ctx, mask=mask)
    np.testing.assert_allclose(np.asarray(out_x), np.asarray(ref_x), rtol=2e-2, atol=2e-3)

    print("KERNEL_OK")
</pallas_src>

<mosaic_0001>
module attributes {stable_mosaic.version = 11 : i64} {
  func.func @_linear_kernel(%arg0: i32, %arg1: i32, %arg2: memref<512x128xf32, #tpu.memory_space<vmem>>, %arg3: memref<128x384xbf16, #tpu.memory_space<vmem>>, %arg4: memref<512x384xbf16, #tpu.memory_space<vmem>>) attributes {dimension_semantics = [#tpu.dimension_semantics<parallel>, #tpu.dimension_semantics<parallel>], iteration_bounds = array<i64: 2, 1>, scalar_prefetch = 0 : i64, scratch_operands = 0 : i64, tpu.core_type = #tpu.core_type<tc>, window_params = [{transform_indices = @transform_0, window_bounds = array<i64: 512, 128>}, {transform_indices = @transform_1, window_bounds = array<i64: 128, 384>}, {transform_indices = @transform_2, window_bounds = array<i64: 512, 384>}]} {
    %c0 = arith.constant 0 : index
    %c0_0 = arith.constant 0 : index
    %0 = vector.load %arg2[%c0, %c0_0] : memref<512x128xf32, #tpu.memory_space<vmem>>, vector<512x128xf32>
    %1 = arith.truncf %0 : vector<512x128xf32> to vector<512x128xbf16>
    %c0_1 = arith.constant 0 : index
    %c0_2 = arith.constant 0 : index
    %2 = vector.load %arg3[%c0_1, %c0_2] : memref<128x384xbf16, #tpu.memory_space<vmem>>, vector<128x384xbf16>
    %cst = arith.constant dense<0.000000e+00> : vector<512x384xf32>
    %3 = tpu.matmul %1, %2, %cst {dimension_numbers = #tpu.dot_dimension_numbers<[1], [0], [0], [1], [0, 0, 1, 1], [], []>} : vector<512x128xbf16>, vector<128x384xbf16>, vector<512x384xf32> -> vector<512x384xf32>
    %4 = arith.truncf %3 : vector<512x384xf32> to vector<512x384xbf16>
    %c0_3 = arith.constant 0 : index
    %c0_4 = arith.constant 0 : index
    %5 = vector.load %arg4[%c0_3, %c0_4] : memref<512x384xbf16, #tpu.memory_space<vmem>>, vector<512x384xbf16>
    tpu.vector_store %arg4[%c0_3, %c0_4], %4 {strides = array<i32>} : memref<512x384xbf16, #tpu.memory_space<vmem>>, vector<512x384xbf16>,
    return
  }
  func.func @transform_0(%arg0: i32, %arg1: i32) -> (i32, i32) {
    %c0_i32 = arith.constant 0 : i32
    %c0_i32_0 = arith.constant 0 : i32
    return %arg1, %c0_i32 : i32, i32
  }
  func.func @transform_1(%arg0: i32, %arg1: i32) -> (i32, i32) {
    %c0_i32 = arith.constant 0 : i32
    %c0_i32_0 = arith.constant 0 : i32
    return %c0_i32, %arg0 : i32, i32
  }
  func.func @transform_2(%arg0: i32, %arg1: i32) -> (i32, i32) {
    %c0_i32 = arith.constant 0 : i32
    return %arg1, %arg0 : i32, i32
  }
}

</mosaic_0001>

<bundles_post_ra>
// kernel: tpu_custom_call.1
= control target key start
LH: loop header
LB: loop body
LE: loop exit
PB: predicated region body
PF: predicated region fallthrough
CT: control target
= control target key end

     0   :  { %7 = vsyncpa [#allocation3], 0  ;;  %s3166_s0 = inlined_call_operand.hbm [shape: f32[512,128], index: 0, kind: input, shape index: {}]   ;;  %s3167_s1 = inlined_call_operand.hbm [shape: bf16[128,768], index: 1, kind: input, shape index: {}]   ;;  %s3168_s2 = inlined_call_operand.hbm [shape: bf16[512,768], index: 2, kind: output, shape index: {}]  }
   0x1   :  { %8 = vsyncpa [#allocation6], 0 }
   0x2   :  { %10 = vsyncpa [#allocation6 + $0x1], 0 }
   0x3   :  { %11 = vsyncpa [#allocation4], 0 }
   0x4   :  { %13 = vsyncpa [#allocation4 + $0x1], 0  ;;  %s2704_s9 = smov 0   ;;  %s2706_s10 = smov 0  }
   0x5   :  { %s2708_s11 = smov 0   ;;  %s2710_s12 = smov 0  }
   0x6   :  { %s2712_s13 = smov 0   ;;  %s2714_s14 = smov 0  }
   0x7 LB: > { %s1985_s15 = sadd.s32 4294967295, %s2675_s14   ;;  %s1986_s16 = sadd.s32 4294967294, %s2675_s14   ;;  %s2675_s14 = sphi %s2714_s14, %s19_s14   ;;  %s2671_s13 = sphi %s2712_s13, %s3196_s13   ;;  %s2667_s12 = sphi %s2710_s12, %s3195_s12   ;;  %s2663_s11 = sphi %s2708_s11, %s3194_s11   ;;  %s2659_s10 = sphi %s2706_s10, %s3193_s10   ;;  %s2655_s9 = sphi %s2704_s9, %s3192_s9  }
   0x8   : > { %s64_s17 = sadd.s32 1, %s2663_s11  ;;  %p71_p0 = scmp.ne.s32.totalorder %s2663_s11, %s2659_s10 }
   0x9   : > { %p72_p1 = scmp.eq.s32.totalorder %s2675_s14, 0  ;;  %p77_p2 = scmp.ne.s32.totalorder %s2659_s10, %s2655_s9 }
   0xa   : > { %p2742_p3 = scmp.eq.s32.totalorder %s1985_s15, 0  ;;  %p103_p4 = scmp.eq.s32.totalorder %s1985_s15, 1 }
   0xb   : > { %p2746_p5 = por %p72_p1, %p71_p0  ;;  %p109_p6 = scmp.eq.s32.totalorder %s1986_s16, 1 }
   0xc   : > { %s3175_s18 = scalar_select %p2742_p3, 1, 0 }
   0xd   : > { %p2752_p7 = por %p2742_p3, %p77_p2  ;;  %p2756_p8 = por %p103_p4, %p71_p0 }
   0xe   : > { %p2760_p9 = por %p109_p6, %p77_p2  ;;  %p1987_p10 = scmp.ge.s32.totalorder %s2675_s14, 1 }
   0xf   : > { %s3177_s20 = scalar_select %p2752_p7, 1, 0 }
  0x10   : > { %s3178_s21 = scalar_select %p2756_p8, 1, 0 }
  0x11   : > { %s3179_s22 = scalar_select %p2760_p9, 1, 0 }
  0x12   : > { %p116_p11 = scmp.lt.s32.totalorder %s2675_s14, 3  ;;  %s2677_s24 = smov [#allocation2]  }
  0x13   : > { %s131_s25 = sshll.u32 %s2677_s24, 4  ;;  %p2438_p1 = scmp.lt.s32.totalorder %s2675_s14, 2  ;;  %s2770_s25 = int_to_ptr.vmem [resolvable:$true] %s131_s25 }
  0x14   : > { %p2766_p12 = pnand %p1987_p10, %p116_p11  ;;  %s31_s28 = sadd.s32 1, %s2671_s13 }
  0x15   : > { %p2784_p4 = pnand %p2438_p1, %p2746_p5  ;;  %p2789_p6 = scmp.ge.s32.totalorder %s31_s28, 2 }
  0x16   : > { %s3180_s23 = scalar_select %p2766_p12, 1, 0 }
  0x17   : > { %p2425_p13 = pneg %p2766_p12  ;;  %s2531_s4 = scalar_lea.hbm %s3166_s0, 8192 }
  0x18   : > { %s3182_s27 = scalar_select %p2784_p4, 1, 0 }
  0x19   : > { %p2778_p2 = pnand %p2425_p13, %p2742_p3  ;;  %p2532_p10 = scmp.ne.s32.totalorder %s3166_s0, %s2531_s4 }
  0x1a   : > { %s3183_s29 = scalar_select %p2789_p6, 1, 0 }
  0x1b   : > { %p2533_p11 = pneg %p2778_p2  ;;  %p2538_p1 = scmp.lt.u32.totalorder %s2531_s4, %s3166_s0 }
  0x1d   : > { %p2534_p13 = pnand %p2533_p11, %p2532_p10 }
  0x1f   : > { %p2535_p5 = pneg %p2534_p13 }
  0x21   : > { %p2540_p0 = pnand %p2538_p1, %p2535_p5 }
  0x23   : > { %2543 = shalt.err (!%p2540_p0)
}
  0x24   : > { %s2544_s15 = scalar_lea.vmem %s2770_s25, 8192  ;;  %p2552_p3 = scmp.lt.s32.totalorder %s2770_s25, %s2770_s25 }
  0x25   : > { %p2545_p9 = scmp.ne.s32.totalorder %s2770_s25, %s2544_s15  ;;  %p2553_p12 = scmp.lt.s32.totalorder %s2544_s15, %s2544_s15 }
  0x27   : > { %p2547_p8 = pnand %p2545_p9, %p2533_p11  ;;  %p2554_p4 = por %p2553_p12, %p2552_p3 }
  0x29   : > { %p2548_p7 = pneg %p2547_p8 }
  0x2b   : > { %p2555_p6 = pnand %p2554_p4, %p2548_p7 }
  0x2d   : > { %2558 = shalt.err (!%p2555_p6)
}
  0x2e   : > { %s2678_s16 = smov 128   ;;  %s2679_s19 = smov 8  }
  0x2f   : > { %2428 = dma.hbm_to_vmem [thread:$0]  (!%p2778_p2), %s3166_s0, 8192, %s2770_s25, [#allocation3], %s2678_s16, %s2678_s16, %s2679_s19  }
  0x30   : > { %s145_s3 = sand.u32 1, %s2663_s11   ;;  %p3184_p3 = scmp.ne.s32.totalorder %s3183_s29, 0 }
  0x31   : > { %s2414_s4 = smul.u32 192, %s145_s3  ;;  %s2834_s16 = scalar_lea.sflag [#allocation6], %s145_s3 }
  0x32   : > { %s3198_s28 = smov (%p3184_p3, %s31_s28), 0  ;;  %s2148_s6 = smul.u32 192, %s2671_s13 }
  0x33   : > { %s61_s5 = ssub.s32 %s2671_s13, %s3198_s28  ;;  %s149_s25 = scalar_lea.vmem [#allocation5], %s2414_s4 }
  0x34   : > { %p62_p7 = scmp.eq.s32.totalorder %s61_s5, 0  ;;  %s2825_s15 = scalar_lea.hbm %s3167_s1, %s2148_s6 }
  0x35   : > { %s156_s26 = sshll.u32 %s149_s25, 4  ;;  %s2559_s19 = scalar_lea.hbm %s2825_s15, 3072  ;;  %s2832_s26 = int_to_ptr.vmem [resolvable:$true] %s156_s26 }
  0x36   : > { %s2830_s29 = scalar_select %p62_p7, %s2663_s11, %s64_s17  }
  0x37   : > { %p2560_p8 = scmp.ne.s32.totalorder %s2825_s15, %s2559_s19  ;;  %p3185_p9 = scmp.ne.s32.totalorder %s3182_s27, 0 }
  0x38   : > { %s2564_s4 = scalar_lea.hbm %s3167_s1, 6144  ;;  %p2565_p4 = scmp.lt.u32.totalorder %s2825_s15, %s3167_s1 }
  0x39   : > { %p2561_p12 = pneg %p3185_p9  ;;  %p2566_p6 = scmp.lt.u32.totalorder %s2564_s4, %s2559_s19 }
  0x3a   : > { %p2568_p11 = scmp.lt.u32.totalorder %s2559_s19, %s2825_s15 }
  0x3b   : > { %p2562_p0 = pnand %p2561_p12, %p2560_p8  ;;  %p2567_p10 = por %p2566_p6, %p2565_p4 }
  0x3d   : > { %p2563_p2 = pneg %p2562_p0  ;;  %p2569_p13 = por %p2568_p11, %p2567_p10 }
  0x3f   : > { %p2570_p5 = pnand %p2569_p13, %p2563_p2 }
  0x41   : > { %2573 = shalt.err (!%p2570_p5)
}
  0x42   : > { %s2574_s17 = scalar_lea.vmem %s2832_s26, 3072  ;;  %s2680_s3 = smov [#allocation5]  }
  0x43   : > { %p2575_p1 = scmp.ne.s32.totalorder %s2832_s26, %s2574_s17  ;;  %s2579_s7 = sshll.u32 %s2680_s3, 4  ;;  %s2580_s7 = int_to_ptr.vmem [resolvable:$false] %s2579_s7 }
  0x44   : > { %s2581_s8 = scalar_lea.vmem %s2580_s7, 6144  ;;  %p2582_p8 = scmp.lt.s32.totalorder %s2832_s26, %s2580_s7 }
  0x45   : > { %p2577_p3 = pnand %p2575_p1, %p2561_p12  ;;  %p2583_p0 = scmp.lt.s32.totalorder %s2581_s8, %s2574_s17 }
  0x47   : > { %p2578_p7 = pneg %p2577_p3  ;;  %p2584_p4 = por %p2583_p0, %p2582_p8 }
  0x49   : > { %p2585_p6 = pnand %p2584_p4, %p2578_p7 }
  0x4b   : > { %2588 = shalt.err (!%p2585_p6)
}
  0x4c   : > { %s2681_s25 = smov 384   ;;  %s2682_s19 = smov 192  }
  0x4d   : > { %s2683_s24 = smov 12   ;;  %p3186_p12 = scmp.ne.s32.totalorder %s3180_s23, 0 }
  0x4e   : > { %2432 = dma.hbm_to_vmem [thread:$0]  (!%p3185_p9), %s2825_s15, 3072, %s2832_s26, %s2834_s16, %s2681_s25, %s2682_s19, %s2683_s24  }
  0x4f   : > { %168 = sbr.rel (%p3186_p12) target bundleno = 543 (0x21f), region = 28  ;;  %p3187_p2 = scmp.ne.s32.totalorder (!%p3186_p12), %s3175_s18, 0 }
  0x56   : > { %2642 = dma.done.wait (%p3187_p2), [#allocation3], 8192  }
  0x57   : > { %2644 = vsyncadd (%p3187_p2), [#allocation3], 4294959104  ;;  %s2869_s30 = sand.u32 1, %s2659_s10   ;;  %p3188_p9 = scmp.ne.s32.totalorder %s3177_s20, 0 }
  0x58   : > { %s2415_s4 = smul.u32 192, %s2869_s30  ;;  %s175_s5 = scalar_lea.sflag [#allocation6], %s2869_s30 }
  0x5a   : > { %s2873_s6 = scalar_lea.vmem [#allocation5], %s2415_s4 }
  0x5b   : > { %2646 = dma.done.wait (%p3188_p9), %s175_s5, 3072  }
  0x5c   : > { %2648 = vsyncadd (%p3188_p9), %s175_s5, 4294964224  ;;  %v2684_v0 = vmov 0   ;;  %v2499_v1 = vld [vmem:[%s2873_s6 + $0x4] ss:$12 sps:$4 sm:$0xff]   ;;  %v2501_v2 = vld [vmem:[%s2873_s6] ss:$12 sps:$4 sm:$0xff]  }
  0x5d   : > { %492 = vmatprep.mubr.bf16.mxu0 %v2684_v0  ;;  %732 = vmatprep.mubr.bf16.mxu1 %v2684_v0  ;;  %v2502_v3 = vld [vmem:[%s2873_s6 + $0x1c] ss:$12 sps:$4 sm:$0xff]   ;;  %v2504_v4 = vld [vmem:[%s2873_s6 + $0x18] ss:$12 sps:$4 sm:$0xff]   ;;  %v2505_v5 = vld [vmem:[%s2873_s6 + $0x34] ss:$12 sps:$4 sm:$0xff]  }
  0x5e   : > { %460 = vmatprep.subr.bf16.mxu0 %v2499_v1  ;;  %2398 = vmatprep.subr.bf16.mxu1 %v2499_v1  ;;  %v2507_v6 = vld [vmem:[%s2873_s6 + $0x30] ss:$12 sps:$4 sm:$0xff]   ;;  %v2508_v7 = vld [vmem:[%s2873_s6 + $0x4c] ss:$12 sps:$4 sm:$0xff]   ;;  %v2510_v8 = vld [vmem:[%s2873_s6 + $0x48] ss:$12 sps:$4 sm:$0xff]  }
  0x5f   : > { %461 = vmatpush1.bf16.msra.mxu0 %v2501_v2  ;;  %2406 = vmatpush1.bf16.msra.mxu1 %v2501_v2  ;;  %v2511_v9 = vld [vmem:[%s2873_s6 + $0x64] ss:$12 sps:$4 sm:$0xff]   ;;  %v2513_v10 = vld [vmem:[%s2873_s6 + $0x60] ss:$12 sps:$4 sm:$0xff]   ;;  %v2514_v11 = vld [vmem:[%s2873_s6 + $0x7c] ss:$12 sps:$4 sm:$0xff]  }
  0x60   : > { %462 = vmatprep.subr.bf16.mxu0 %v2502_v3  ;;  %2399 = vmatprep.subr.bf16.mxu1 %v2502_v3  ;;  %v2516_v12 = vld [vmem:[%s2873_s6 + $0x78] ss:$12 sps:$4 sm:$0xff]   ;;  %v2517_v13 = vld [vmem:[%s2873_s6 + $0x94] ss:$12 sps:$4 sm:$0xff]   ;;  %v2519_v14 = vld [vmem:[%s2873_s6 + $0x90] ss:$12 sps:$4 sm:$0xff]  }
  0x61   : > { %v2520_v15 = vld [vmem:[%s2873_s6 + $0xac] ss:$12 sps:$4 sm:$0xff]   ;;  %v2522_v16 = vld [vmem:[%s2873_s6 + $0xa8] ss:$12 sps:$4 sm:$0xff]   ;;  %v204_v17 = vld [vmem:[#allocation2] sm:$0xff]  ;;  %s2416_s18 = smul.u32 768, %s2869_s30 }
  0x62   : > { %v205_v18 = vld [vmem:[#allocation2 + $0x8] sm:$0xff]  ;;  %v252_v19 = vld [vmem:[#allocation2 + $0x180] sm:$0xff]  ;;  %v206_v25 = vld [vmem:[#allocation2 + $0x10] sm:$0xff]  ;;  %s2277_s23 = smul.u32 192, %s2667_s12  ;;  %s1871_s16 = scalar_lea.sflag [#allocation4], %s2869_s30 }
  0x63   : > { %463 = vmatpush1.bf16.msra.mxu0 %v2504_v4  ;;  %2407 = vmatpush1.bf16.msra.mxu1 %v2504_v4  ;;  %v253_v20 = vld [vmem:[#allocation2 + $0x188] sm:$0xff]  ;;  %v2898_v22 = vpack.c.bf16 %v205_v18, %v204_v17  ;;  %v207_v26 = vld [vmem:[#allocation2 + $0x18] sm:$0xff]  ;;  %v254_v27 = vld [vmem:[#allocation2 + $0x190] sm:$0xff]  ;;  %s2980_s20 = scalar_lea.vmem [#allocation7], %s2416_s18  ;;  %p3189_p11 = scmp.ne.s32.totalorder %s3178_s21, 0 }
  0x64   : > { %464 = vmatprep.subr.bf16.mxu0 %v2505_v5  ;;  %2400 = vmatprep.subr.bf16.mxu1 %v2505_v5  ;;  %v2523_v21 = vld [vmem:[%s2873_s6 + $0x8] ss:$12 sps:$4 sm:$0xff]   ;;  %v2900_v23 = vpack.c.bf16 %v253_v20, %v252_v19  ;;  %v2524_v24 = vld [vmem:[%s2873_s6 + $0x20] ss:$12 sps:$4 sm:$0xff]   ;;  %v255_v28 = vld [vmem:[#allocation2 + $0x198] sm:$0xff]  ;;  %v2908_v30 = vpack.c.bf16 %v207_v26, %v206_v25  ;;  %s1887_s27 = sshll.u32 %s2980_s20, 4  ;;  %s3109_s12 = scalar_lea.hbm %s3168_s2, %s2277_s23  ;;  %s3112_s27 = int_to_ptr.vmem [resolvable:$true] %s1887_s27 }
  0x65   : > { %v2525_v29 = vld [vmem:[%s2873_s6 + $0x38] ss:$12 sps:$4 sm:$0xff]   ;;  %v2910_v31 = vpack.c.bf16 %v255_v28, %v254_v27  ;;  %v2526_v32 = vld [vmem:[%s2873_s6 + $0x50] ss:$12 sps:$4 sm:$0xff]   ;;  %v209_v34 = vld [vmem:[#allocation2 + $0x28] sm:$0xff]  ;;  %s2589_s17 = scalar_lea.vmem %s3112_s27, 12288 }
  0x66   : > { %v208_v33 = vld [vmem:[#allocation2 + $0x20] sm:$0xff]  ;;  %v257_v36 = vld [vmem:[#allocation2 + $0x1a8] sm:$0xff]  ;;  %v210_v41 = vld [vmem:[#allocation2 + $0x30] sm:$0xff]  ;;  %p2590_p10 = scmp.ne.s32.totalorder %s3112_s27, %s2589_s17  ;;  %s2685_s3 = smov [#allocation7]  }
  0x67   : > { %465 = vmatpush1.bf16.msra.mxu0 %v2507_v6  ;;  %2408 = vmatpush1.bf16.msra.mxu1 %v2507_v6  ;;  %v256_v35 = vld [vmem:[#allocation2 + $0x1a0] sm:$0xff]  ;;  %v2527_v37 = vld [vmem:[%s2873_s6 + $0x68] ss:$12 sps:$4 sm:$0xff]   ;;  %v2918_v38 = vpack.c.bf16 %v209_v34, %v208_v33  ;;  %v211_v42 = vld [vmem:[#allocation2 + $0x38] sm:$0xff]  ;;  %s2593_s7 = sshll.u32 %s2685_s3, 4  ;;  %s2594_s7 = int_to_ptr.vmem [resolvable:$false] %s2593_s7 }
  0x68   : > { %466 = vmatprep.subr.bf16.mxu0 %v2508_v7  ;;  %2401 = vmatprep.subr.bf16.mxu1 %v2508_v7  ;;  %v2920_v39 = vpack.c.bf16 %v257_v36, %v256_v35  ;;  %v2528_v40 = vld [vmem:[%s2873_s6 + $0x80] ss:$12 sps:$4 sm:$0xff]   ;;  %v258_v43 = vld [vmem:[#allocation2 + $0x1b0] sm:$0xff]  ;;  %v259_v44 = vld [vmem:[#allocation2 + $0x1b8] sm:$0xff]  ;;  %v271_v46 = vpack.c.bf16 %v211_v42, %v210_v41  ;;  %p2591_p13 = pnand %p2590_p10, %p3189_p11  ;;  %s2595_s8 = scalar_lea.vmem %s2594_s7, 24576 }
  0x69   : > { %v2529_v45 = vld [vmem:[%s2873_s6 + $0x98] ss:$12 sps:$4 sm:$0xff]   ;;  %v2928_v47 = vpack.c.bf16 %v259_v44, %v258_v43  ;;  %v2530_v48 = vld [vmem:[%s2873_s6 + $0xb0] ss:$12 sps:$4 sm:$0xff]   ;;  %v213_v50 = vld [vmem:[#allocation2 + $0x48] sm:$0xff]  ;;  %p2596_p1 = scmp.lt.s32.totalorder %s3112_s27, %s2594_s7  ;;  %p2597_p3 = scmp.lt.s32.totalorder %s2595_s8, %s2589_s17 }
  0x6a   : > { %v212_v49 = vld [vmem:[#allocation2 + $0x40] sm:$0xff]  ;;  %v261_v52 = vld [vmem:[#allocation2 + $0x1c8] sm:$0xff]  ;;  %v214_v55 = vld [vmem:[#allocation2 + $0x50] sm:$0xff]  ;;  %p2592_p5 = pneg %p2591_p13 }
  0x6b   : > { %467 = vmatpush1.bf16.msra.mxu0 %v2510_v8  ;;  %2409 = vmatpush1.bf16.msra.mxu1 %v2510_v8  ;;  %v260_v51 = vld [vmem:[#allocation2 + $0x1c0] sm:$0xff]  ;;  %v272_v53 = vpack.c.bf16 %v213_v50, %v212_v49  ;;  %v215_v56 = vld [vmem:[#allocation2 + $0x58] sm:$0xff]  ;;  %v262_v57 = vld [vmem:[#allocation2 + $0x1d0] sm:$0xff]  ;;  %p2598_p7 = por %p2597_p3, %p2596_p1 }
  0x6c   : > { %468 = vmatprep.subr.bf16.mxu0 %v2511_v9  ;;  %2402 = vmatprep.subr.bf16.mxu1 %v2511_v9  ;;  %v2934_v54 = vpack.c.bf16 %v261_v52, %v260_v51  ;;  %v263_v58 = vld [vmem:[#allocation2 + $0x1d8] sm:$0xff]  ;;  %v273_v59 = vpack.c.bf16 %v215_v56, %v214_v55  ;;  %v216_v61 = vld [vmem:[#allocation2 + $0x60] sm:$0xff]  ;;  %v217_v62 = vld [vmem:[#allocation2 + $0x68] sm:$0xff] }
  0x6d   : > { %v2939_v60 = vpack.c.bf16 %v263_v58, %v262_v57  ;;  %v264_v63 = vld [vmem:[#allocation2 + $0x1e0] sm:$0xff]  ;;  %v265_v1 = vld [vmem:[#allocation2 + $0x1e8] sm:$0xff]  ;;  %v274_v2 = vpack.c.bf16 %v217_v62, %v216_v61  ;;  %v218_v4 = vld [vmem:[#allocation2 + $0x70] sm:$0xff]  ;;  %p2599_p8 = pnand %p2598_p7, %p2592_p5 }
  0x6e   : > { %v2944_v3 = vpack.c.bf16 %v265_v1, %v264_v63  ;;  %v219_v5 = vld [vmem:[#allocation2 + $0x78] sm:$0xff]  ;;  %v266_v6 = vld [vmem:[#allocation2 + $0x1f0] sm:$0xff]  ;;  %v225_v17 = vld [vmem:[#allocation2 + $0xa8] sm:$0xff] }
  0x6f   : > { %469 = vmatpush1.bf16.msra.mxu0 %v2513_v10  ;;  %2410 = vmatpush1.bf16.msra.mxu1 %v2513_v10  ;;  %v267_v7 = vld [vmem:[#allocation2 + $0x1f8] sm:$0xff]  ;;  %v275_v8 = vpack.c.bf16 %v219_v5, %v218_v4  ;;  %v220_v10 = vld [vmem:[#allocation2 + $0x80] sm:$0xff]  ;;  %v226_v19 = vld [vmem:[#allocation2 + $0xb0] sm:$0xff] }
  0x70   : > { %470 = vmatprep.subr.bf16.mxu0 %v2514_v11  ;;  %2403 = vmatprep.subr.bf16.mxu1 %v2514_v11  ;;  %v2949_v9 = vpack.c.bf16 %v267_v7, %v266_v6  ;;  %v221_v11 = vld [vmem:[#allocation2 + $0x88] sm:$0xff]  ;;  %v227_v20 = vld [vmem:[#allocation2 + $0xb8] sm:$0xff]  ;;  %v230_v26 = vld [vmem:[#allocation2 + $0xd0] sm:$0xff] }
  0x71   : > { %v231_v27 = vld [vmem:[#allocation2 + $0xd8] sm:$0xff]  ;;  %v234_v33 = vld [vmem:[#allocation2 + $0xf0] sm:$0xff]  ;;  %v236_v35 = vld [vmem:[#allocation2 + $0x100] sm:$0xff] }
  0x72   : > { %v281_v28 = vpack.c.bf16 %v231_v27, %v230_v26  ;;  %v235_v34 = vld [vmem:[#allocation2 + $0xf8] sm:$0xff]  ;;  %v237_v36 = vld [vmem:[#allocation2 + $0x108] sm:$0xff]  ;;  %v240_v42 = vld [vmem:[#allocation2 + $0x120] sm:$0xff] }
  0x73   : > { %471 = vmatpush1.bf16.msra.mxu0 %v2516_v12  ;;  %2411 = vmatpush1.bf16.msra.mxu1 %v2516_v12  ;;  %v276_v12 = vpack.c.bf16 %v221_v11, %v220_v10  ;;  %v239_v41 = vld [vmem:[#allocation2 + $0x118] sm:$0xff]  ;;  %v241_v43 = vld [vmem:[#allocation2 + $0x128] sm:$0xff]  ;;  %v244_v49 = vld [vmem:[#allocation2 + $0x140] sm:$0xff] }
  0x74   : > { %472 = vmatprep.subr.bf16.mxu0 %v2517_v13  ;;  %2404 = vmatprep.subr.bf16.mxu1 %v2517_v13  ;;  %v222_v13 = vld [vmem:[#allocation2 + $0x90] sm:$0xff]  ;;  %v245_v50 = vld [vmem:[#allocation2 + $0x148] sm:$0xff]  ;;  %v247_v55 = vld [vmem:[#allocation2 + $0x158] sm:$0xff] }
  0x75   : > { %v288_v52 = vpack.c.bf16 %v245_v50, %v244_v49  ;;  %v248_v56 = vld [vmem:[#allocation2 + $0x160] sm:$0xff]  ;;  %v249_v57 = vld [vmem:[#allocation2 + $0x168] sm:$0xff]  ;;  %v250_v61 = vld [vmem:[#allocation2 + $0x170] sm:$0xff] }
  0x76   : > { %v251_v62 = vld [vmem:[#allocation2 + $0x178] sm:$0xff] }
  0x77   : > { %473 = vmatpush1.bf16.msra.mxu0 %v2519_v14  ;;  %2412 = vmatpush1.bf16.msra.mxu1 %v2519_v14  ;;  %v223_v14 = vld [vmem:[#allocation2 + $0x98] sm:$0xff]  ;;  %v291_v63 = vpack.c.bf16 %v251_v62, %v250_v61 }
  0x78   : > { %474 = vmatprep.subr.bf16.mxu0 %v2520_v15  ;;  %2405 = vmatprep.subr.bf16.mxu1 %v2520_v15  ;;  %v277_v15 = vpack.c.bf16 %v223_v14, %v222_v13 }
  0x7b   : > { %475 = vmatpush1.bf16.msra.mxu0 %v2522_v16  ;;  %2413 = vmatpush1.bf16.msra.mxu1 %v2522_v16  ;;  %v224_v16 = vld [vmem:[#allocation2 + $0xa0] sm:$0xff] }
  0x7c   : > { %2318 = vmatprep.subr.bf16.mxu1 %v2523_v21  ;;  %v278_v18 = vpack.c.bf16 %v225_v17, %v224_v16 }
  0x7e   : > { %493 = vmatmul.mubr.bf16.vlgmr.msra.gmra.mrb[0].mxu0 %v2898_v22  ;;  %733 = vmatmul.mubr.bf16.vlgmr.msra.gmra.mrb[0].mxu1 %v2900_v23 }
  0x7f   : > { %2319 = vmatpush3.bf16.msra.mxu1 %v2523_v21  ;;  %502 = vmatprep.mubr.bf16.mxu0 %v2684_v0  ;;  %v279_v21 = vpack.c.bf16 %v227_v20, %v226_v19 }
  0x80   : > { %742 = vmatprep.mubr.bf16.mxu1 %v2684_v0  ;;  %2320 = vmatprep.subr.bf16.mxu1 %v2524_v24 }
  0x83   : > { %2321 = vmatpush3.bf16.msra.mxu1 %v2524_v24  ;;  %v229_v24 = vld [vmem:[#allocation2 + $0xc8] sm:$0xff] }
  0x84   : > { %2322 = vmatprep.subr.bf16.mxu1 %v2525_v29 }
  0x86   : > { %503 = vmatmul.mubr.bf16.gmra.mrb[4].mxu0 %v2908_v30  ;;  %743 = vmatmul.mubr.bf16.gmra.mrb[4].mxu1 %v2910_v31 }
  0x87   : > { %512 = vmatprep.mubr.bf16.mxu0 %v2684_v0  ;;  %752 = vmatprep.mubr.bf16.mxu1 %v2684_v0 }
  0x88   : > { %2323 = vmatpush3.bf16.msra.mxu1 %v2525_v29  ;;  %v232_v29 = vld [vmem:[#allocation2 + $0xe0] sm:$0xff] }
  0x89   : > { %2324 = vmatprep.subr.bf16.mxu1 %v2526_v32 }
  0x8c   : > { %2325 = vmatpush3.bf16.msra.mxu1 %v2526_v32 }
  0x8d   : > { %2326 = vmatprep.subr.bf16.mxu1 %v2527_v37 }
  0x8e   : > { %513 = vmatmul.mubr.bf16.gmra.mrb[8].mxu0 %v2918_v38  ;;  %753 = vmatmul.mubr.bf16.gmra.mrb[8].mxu1 %v2920_v39 }
  0x8f   : > { %522 = vmatprep.mubr.bf16.mxu0 %v2684_v0  ;;  %762 = vmatprep.mubr.bf16.mxu1 %v2684_v0 }
  0x90   : > { %2327 = vmatpush3.bf16.msra.mxu1 %v2527_v37  ;;  %v283_v37 = vpack.c.bf16 %v235_v34, %v234_v33 }
  0x91   : > { %2328 = vmatprep.subr.bf16.mxu1 %v2528_v40 }
  0x94   : > { %2329 = vmatpush3.bf16.msra.mxu1 %v2528_v40  ;;  %v238_v40 = vld [vmem:[#allocation2 + $0x110] sm:$0xff] }
  0x95   : > { %2330 = vmatprep.subr.bf16.mxu1 %v2529_v45  ;;  %v285_v44 = vpack.c.bf16 %v239_v41, %v238_v40 }
  0x96   : > { %523 = vmatmul.mubr.bf16.gmra.mrb[12].mxu0 %v271_v46  ;;  %763 = vmatmul.mubr.bf16.gmra.mrb[12].mxu1 %v2928_v47 }
  0x97   : > { %532 = vmatprep.mubr.bf16.mxu0 %v2684_v0  ;;  %772 = vmatprep.mubr.bf16.mxu1 %v2684_v0 }
  0x98   : > { %2331 = vmatpush3.bf16.msra.mxu1 %v2529_v45  ;;  %v286_v45 = vpack.c.bf16 %v241_v43, %v240_v42 }
  0x99   : > { %2332 = vmatprep.subr.bf16.mxu1 %v2530_v48 }
  0x9c   : > { %2333 = vmatpush3.bf16.msra.mxu1 %v2530_v48  ;;  %v243_v48 = vld [vmem:[#allocation2 + $0x138] sm:$0xff] }
  0x9e   : > { %533 = vmatmul.mubr.bf16.gmra.mrb[16].mxu0 %v272_v53  ;;  %773 = vmatmul.mubr.bf16.gmra.mrb[16].mxu1 %v2934_v54 }
  0x9f   : > { %542 = vmatprep.mubr.bf16.mxu0 %v2684_v0  ;;  %782 = vmatprep.mubr.bf16.mxu1 %v2684_v0 }
  0xa6   : > { %543 = vmatmul.mubr.bf16.gmra.mrb[20].mxu0 %v273_v59  ;;  %783 = vmatmul.mubr.bf16.gmra.mrb[20].mxu1 %v2939_v60 }
  0xa7   : > { %552 = vmatprep.mubr.bf16.mxu0 %v2684_v0  ;;  %792 = vmatprep.mubr.bf16.mxu1 %v2684_v0 }
  0xae   : > { %553 = vmatmul.mubr.bf16.gmra.mrb[24].mxu0 %v274_v2  ;;  %793 = vmatmul.mubr.bf16.gmra.mrb[24].mxu1 %v2944_v3 }
  0xaf   : > { %562 = vmatprep.mubr.bf16.mxu0 %v2684_v0  ;;  %802 = vmatprep.mubr.bf16.mxu1 %v2684_v0 }
  0xb6   : > { %563 = vmatmul.mubr.bf16.gmra.mrb[28].mxu0 %v275_v8  ;;  %803 = vmatmul.mubr.bf16.gmra.mrb[28].mxu1 %v2949_v9 }
  0xb7   : > { %572 = vmatprep.mubr.bf16.mxu0 %v2684_v0  ;;  %2334 = vmatprep.mubr.bf16.mxu1 %v2898_v22  ;;  %v228_v22 = vld [vmem:[#allocation2 + $0xc0] sm:$0xff] }
  0xb8   : > { %v280_v25 = vpack.c.bf16 %v229_v24, %v228_v22 }
  0xbe   : > { %573 = vmatmul.mubr.bf16.gmra.mrb[32].mxu0 %v276_v12  ;;  %2335 = vmatmul.mubr.bf16.vlgmr.msra.gmra.mrb[32].mxu1 %v2908_v30  ;;  %v233_v30 = vld [vmem:[#allocation2 + $0xe8] sm:$0xff] }
  0xbf   : > { %582 = vmatprep.mubr.bf16.mxu0 %v2684_v0  ;;  %2338 = vmatprep.mubr.bf16.mxu1 %v2918_v38  ;;  %v282_v32 = vpack.c.bf16 %v233_v30, %v232_v29  ;;  %v284_v38 = vpack.c.bf16 %v237_v36, %v236_v35 }
  0xc6   : > { %583 = vmatmul.mubr.bf16.gmra.mrb[36].mxu0 %v277_v15  ;;  %2339 = vmatmul.mubr.bf16.gmra.mrb[36].mxu1 %v271_v46  ;;  %v242_v46 = vld [vmem:[#allocation2 + $0x130] sm:$0xff] }
  0xc7   : > { %592 = vmatprep.mubr.bf16.mxu0 %v2684_v0  ;;  %2342 = vmatprep.mubr.bf16.mxu1 %v272_v53  ;;  %v287_v51 = vpack.c.bf16 %v243_v48, %v242_v46  ;;  %v246_v53 = vld [vmem:[#allocation2 + $0x150] sm:$0xff] }
  0xc8   : > { %v289_v58 = vpack.c.bf16 %v247_v55, %v246_v53 }
  0xce   : > { %593 = vmatmul.mubr.bf16.gmra.mrb[40].mxu0 %v278_v18  ;;  %2343 = vmatmul.mubr.bf16.gmra.mrb[40].mxu1 %v273_v59  ;;  %v290_v59 = vpack.c.bf16 %v249_v57, %v248_v56 }
  0xcf   : > { %602 = vmatprep.mubr.bf16.mxu0 %v2684_v0  ;;  %2346 = vmatprep.mubr.bf16.mxu1 %v274_v2 }
  0xd6   : > { %603 = vmatmul.mubr.bf16.gmra.mrb[44].mxu0 %v279_v21  ;;  %2347 = vmatmul.mubr.bf16.gmra.mrb[44].mxu1 %v275_v8 }
  0xd7   : > { %612 = vmatprep.mubr.bf16.mxu0 %v2684_v0  ;;  %2350 = vmatprep.mubr.bf16.mxu1 %v276_v12 }
  0xde   : > { %613 = vmatmul.mubr.bf16.gmra.mrb[48].mxu0 %v280_v25  ;;  %2351 = vmatmul.mubr.bf16.gmra.mrb[48].mxu1 %v277_v15 }
  0xdf   : > { %622 = vmatprep.mubr.bf16.mxu0 %v2684_v0  ;;  %2354 = vmatprep.mubr.bf16.mxu1 %v278_v18 }
  0xe6   : > { %623 = vmatmul.mubr.bf16.gmra.mrb[52].mxu0 %v281_v28  ;;  %2355 = vmatmul.mubr.bf16.gmra.mrb[52].mxu1 %v279_v21 }
  0xe7   : > { %632 = vmatprep.mubr.bf16.mxu0 %v2684_v0  ;;  %2358 = vmatprep.mubr.bf16.mxu1 %v280_v25 }
  0xee   : > { %633 = vmatmul.mubr.bf16.gmra.mrb[56].mxu0 %v282_v32  ;;  %2359 = vmatmul.mubr.bf16.gmra.mrb[56].mxu1 %v281_v28 }
  0xef   : > { %642 = vmatprep.mubr.bf16.mxu0 %v2684_v0  ;;  %2362 = vmatprep.mubr.bf16.mxu1 %v282_v32 }
  0xf6   : > { %643 = vmatmul.mubr.bf16.gmra.mrb[60].mxu0 %v283_v37  ;;  %2363 = vmatmul.mubr.bf16.gmra.mrb[60].mxu1 %v283_v37 }
  0xf7   : > { %652 = vmatprep.mubr.bf16.mxu0 %v2684_v0  ;;  %2366 = vmatprep.mubr.bf16.mxu1 %v284_v38 }
  0xfe   : > { %653 = vmatmul.mubr.bf16.gmra.mrb[64].mxu0 %v284_v38  ;;  %2367 = vmatmul.mubr.bf16.gmra.mrb[64].mxu1 %v285_v44 }
  0xff   : > { %662 = vmatprep.mubr.bf16.mxu0 %v2684_v0  ;;  %2370 = vmatprep.mubr.bf16.mxu1 %v286_v45 }
 0x106   : > { %663 = vmatmul.mubr.bf16.gmra.mrb[68].mxu0 %v285_v44  ;;  %2371 = vmatmul.mubr.bf16.gmra.mrb[68].mxu1 %v287_v51 }
 0x107   : > { %672 = vmatprep.mubr.bf16.mxu0 %v2684_v0  ;;  %2374 = vmatprep.mubr.bf16.mxu1 %v288_v52 }
 0x10e   : > { %673 = vmatmul.mubr.bf16.gmra.mrb[72].mxu0 %v286_v45  ;;  %2375 = vmatmul.mubr.bf16.gmra.mrb[72].mxu1 %v289_v58 }
 0x10f   : > { %682 = vmatprep.mubr.bf16.mxu0 %v2684_v0  ;;  %2378 = vmatprep.mubr.bf16.mxu1 %v290_v59 }
 0x116   : > { %683 = vmatmul.mubr.bf16.gmra.mrb[76].mxu0 %v287_v51  ;;  %2379 = vmatmul.mubr.bf16.gmra.mrb[76].mxu1 %v291_v63 }
 0x117   : > { %692 = vmatprep.mubr.bf16.mxu0 %v2684_v0  ;;  %2382 = vmatprep.mubr.bf16.mxu1 %v2900_v23 }
 0x11e   : > { %693 = vmatmul.mubr.bf16.gmra.mrb[80].mxu0 %v288_v52  ;;  %2383 = vmatmul.mubr.bf16.gmra.mrb[80].mxu1 %v2910_v31 }
 0x11f   : > { %702 = vmatprep.mubr.bf16.mxu0 %v2684_v0  ;;  %2386 = vmatprep.mubr.bf16.mxu1 %v2920_v39 }
 0x126   : > { %703 = vmatmul.mubr.bf16.gmra.mrb[84].mxu0 %v289_v58  ;;  %2387 = vmatmul.mubr.bf16.gmra.mrb[84].mxu1 %v2928_v47 }
 0x127   : > { %712 = vmatprep.mubr.bf16.mxu0 %v2684_v0  ;;  %2390 = vmatprep.mubr.bf16.mxu1 %v2934_v54 }
 0x12e   : > { %713 = vmatmul.mubr.bf16.gmra.mrb[88].mxu0 %v290_v59  ;;  %2391 = vmatmul.mubr.bf16.gmra.mrb[88].mxu1 %v2939_v60 }
 0x12f   : > { %722 = vmatprep.mubr.bf16.mxu0 %v2684_v0  ;;  %2394 = vmatprep.mubr.bf16.mxu1 %v2944_v3 }
 0x136   : > { %723 = vmatmul.mubr.bf16.gmra.mrb[92].mxu0 %v291_v63  ;;  %2395 = vmatmul.mubr.bf16.gmra.mrb[92].mxu1 %v2949_v9 }
 0x151   : > { %v494_v23 = vpop.f32.mrb[0].mxu0  ;;  %v734_v31 = vpop.f32.mrb[0].mxu1 }
 0x152   : > { %v496_v39 = vpop.f32.mrb[1].mxu0  ;;  %v736_v1 = vpop.f32.mrb[1].mxu1 }
 0x153   : > { %v2149_v47 = vpack.c.bf16 %v496_v39, %v494_v23  ;;  %v2245_v2 = vpack.c.bf16 %v736_v1, %v734_v31  ;;  %v498_v4 = vpop.f32.mrb[2].mxu0  ;;  %v738_v5 = vpop.f32.mrb[2].mxu1 }
 0x154   : > { %v500_v54 = vpop.f32.mrb[3].mxu0  ;;  %v740_v6 = vpop.f32.mrb[3].mxu1 }
 0x155   : > { %1742 = vst [vmem:[%s2980_s20] sm:$0xff] %v2149_v47  ;;  %1838 = vst [vmem:[%s2980_s20 + $0x240] sm:$0xff] %v2245_v2  ;;  %v2151_v0 = vpack.c.bf16 %v500_v54, %v498_v4  ;;  %v2247_v60 = vpack.c.bf16 %v740_v6, %v738_v5 }
 0x157   : > { %1744 = vst [vmem:[%s2980_s20 + $0xc] sm:$0xff] %v2151_v0  ;;  %1840 = vst [vmem:[%s2980_s20 + $0x24c] sm:$0xff] %v2247_v60 }
 0x159   : > { %v504_v3 = vpop.f32.mrb[4].mxu0  ;;  %v744_v7 = vpop.f32.mrb[4].mxu1 }
 0x15a   : > { %v506_v8 = vpop.f32.mrb[5].mxu0  ;;  %v746_v9 = vpop.f32.mrb[5].mxu1 }
 0x15b   : > { %v2153_v10 = vpack.c.bf16 %v506_v8, %v504_v3  ;;  %v2249_v11 = vpack.c.bf16 %v746_v9, %v744_v7  ;;  %v508_v12 = vpop.f32.mrb[6].mxu0  ;;  %v748_v13 = vpop.f32.mrb[6].mxu1 }
 0x15c   : > { %v510_v14 = vpop.f32.mrb[7].mxu0  ;;  %v750_v15 = vpop.f32.mrb[7].mxu1 }
 0x15d   : > { %1746 = vst [vmem:[%s2980_s20 + $0x18] sm:$0xff] %v2153_v10  ;;  %1842 = vst [vmem:[%s2980_s20 + $0x258] sm:$0xff] %v2249_v11  ;;  %v2155_v16 = vpack.c.bf16 %v510_v14, %v508_v12  ;;  %v2251_v17 = vpack.c.bf16 %v750_v15, %v748_v13 }
 0x15f   : > { %1748 = vst [vmem:[%s2980_s20 + $0x24] sm:$0xff] %v2155_v16  ;;  %1844 = vst [vmem:[%s2980_s20 + $0x264] sm:$0xff] %v2251_v17 }
 0x161   : > { %v514_v18 = vpop.f32.mrb[8].mxu0  ;;  %v754_v19 = vpop.f32.mrb[8].mxu1 }
 0x162   : > { %v516_v20 = vpop.f32.mrb[9].mxu0  ;;  %v756_v21 = vpop.f32.mrb[9].mxu1 }
 0x163   : > { %v2157_v22 = vpack.c.bf16 %v516_v20, %v514_v18  ;;  %v2253_v24 = vpack.c.bf16 %v756_v21, %v754_v19  ;;  %v518_v25 = vpop.f32.mrb[10].mxu0  ;;  %v758_v26 = vpop.f32.mrb[10].mxu1 }
 0x164   : > { %v520_v27 = vpop.f32.mrb[11].mxu0  ;;  %v760_v28 = vpop.f32.mrb[11].mxu1 }
 0x165   : > { %1750 = vst [vmem:[%s2980_s20 + $0x30] sm:$0xff] %v2157_v22  ;;  %1846 = vst [vmem:[%s2980_s20 + $0x270] sm:$0xff] %v2253_v24  ;;  %v2159_v29 = vpack.c.bf16 %v520_v27, %v518_v25  ;;  %v2255_v30 = vpack.c.bf16 %v760_v28, %v758_v26 }
 0x167   : > { %1752 = vst [vmem:[%s2980_s20 + $0x3c] sm:$0xff] %v2159_v29  ;;  %1848 = vst [vmem:[%s2980_s20 + $0x27c] sm:$0xff] %v2255_v30 }
 0x169   : > { %v524_v32 = vpop.f32.mrb[12].mxu0  ;;  %v764_v33 = vpop.f32.mrb[12].mxu1 }
 0x16a   : > { %v526_v34 = vpop.f32.mrb[13].mxu0  ;;  %v766_v35 = vpop.f32.mrb[13].mxu1 }
 0x16b   : > { %v2161_v36 = vpack.c.bf16 %v526_v34, %v524_v32  ;;  %v2257_v37 = vpack.c.bf16 %v766_v35, %v764_v33  ;;  %v528_v38 = vpop.f32.mrb[14].mxu0  ;;  %v768_v40 = vpop.f32.mrb[14].mxu1 }
 0x16c   : > { %v530_v41 = vpop.f32.mrb[15].mxu0  ;;  %v770_v42 = vpop.f32.mrb[15].mxu1 }
 0x16d   : > { %1754 = vst [vmem:[%s2980_s20 + $0x48] sm:$0xff] %v2161_v36  ;;  %1850 = vst [vmem:[%s2980_s20 + $0x288] sm:$0xff] %v2257_v37  ;;  %v2163_v43 = vpack.c.bf16 %v530_v41, %v528_v38  ;;  %v2259_v44 = vpack.c.bf16 %v770_v42, %v768_v40 }
 0x16f   : > { %1756 = vst [vmem:[%s2980_s20 + $0x54] sm:$0xff] %v2163_v43  ;;  %1852 = vst [vmem:[%s2980_s20 + $0x294] sm:$0xff] %v2259_v44 }
 0x171   : > { %v534_v45 = vpop.f32.mrb[16].mxu0  ;;  %v774_v46 = vpop.f32.mrb[16].mxu1 }
 0x172   : > { %v536_v48 = vpop.f32.mrb[17].mxu0  ;;  %v776_v49 = vpop.f32.mrb[17].mxu1 }
 0x173   : > { %v2165_v50 = vpack.c.bf16 %v536_v48, %v534_v45  ;;  %v2261_v51 = vpack.c.bf16 %v776_v49, %v774_v46  ;;  %v538_v52 = vpop.f32.mrb[18].mxu0  ;;  %v778_v53 = vpop.f32.mrb[18].mxu1 }
 0x174   : > { %v540_v55 = vpop.f32.mrb[19].mxu0  ;;  %v780_v56 = vpop.f32.mrb[19].mxu1 }
 0x175   : > { %1758 = vst [vmem:[%s2980_s20 + $0x60] sm:$0xff] %v2165_v50  ;;  %1854 = vst [vmem:[%s2980_s20 + $0x2a0] sm:$0xff] %v2261_v51  ;;  %v2167_v57 = vpack.c.bf16 %v540_v55, %v538_v52  ;;  %v2263_v58 = vpack.c.bf16 %v780_v56, %v778_v53 }
 0x177   : > { %1760 = vst [vmem:[%s2980_s20 + $0x6c] sm:$0xff] %v2167_v57  ;;  %1856 = vst [vmem:[%s2980_s20 + $0x2ac] sm:$0xff] %v2263_v58 }
 0x179   : > { %v544_v59 = vpop.f32.mrb[20].mxu0  ;;  %v784_v61 = vpop.f32.mrb[20].mxu1 }
 0x17a   : > { %v546_v62 = vpop.f32.mrb[21].mxu0  ;;  %v786_v63 = vpop.f32.mrb[21].mxu1 }
 0x17b   : > { %v2169_v23 = vpack.c.bf16 %v546_v62, %v544_v59  ;;  %v2265_v31 = vpack.c.bf16 %v786_v63, %v784_v61  ;;  %v548_v39 = vpop.f32.mrb[22].mxu0  ;;  %v788_v1 = vpop.f32.mrb[22].mxu1 }
 0x17c   : > { %v550_v47 = vpop.f32.mrb[23].mxu0  ;;  %v790_v2 = vpop.f32.mrb[23].mxu1 }
 0x17d   : > { %1762 = vst [vmem:[%s2980_s20 + $0x78] sm:$0xff] %v2169_v23  ;;  %1858 = vst [vmem:[%s2980_s20 + $0x2b8] sm:$0xff] %v2265_v31  ;;  %v2171_v4 = vpack.c.bf16 %v550_v47, %v548_v39  ;;  %v2267_v5 = vpack.c.bf16 %v790_v2, %v788_v1 }
 0x17f   : > { %1764 = vst [vmem:[%s2980_s20 + $0x84] sm:$0xff] %v2171_v4  ;;  %1860 = vst [vmem:[%s2980_s20 + $0x2c4] sm:$0xff] %v2267_v5 }
 0x181   : > { %v554_v54 = vpop.f32.mrb[24].mxu0  ;;  %v794_v6 = vpop.f32.mrb[24].mxu1 }
 0x182   : > { %v556_v0 = vpop.f32.mrb[25].mxu0  ;;  %v796_v60 = vpop.f32.mrb[25].mxu1 }
 0x183   : > { %v2173_v3 = vpack.c.bf16 %v556_v0, %v554_v54  ;;  %v2269_v7 = vpack.c.bf16 %v796_v60, %v794_v6  ;;  %v558_v8 = vpop.f32.mrb[26].mxu0  ;;  %v798_v9 = vpop.f32.mrb[26].mxu1 }
 0x184   : > { %v560_v10 = vpop.f32.mrb[27].mxu0  ;;  %v800_v11 = vpop.f32.mrb[27].mxu1 }
 0x185   : > { %1766 = vst [vmem:[%s2980_s20 + $0x90] sm:$0xff] %v2173_v3  ;;  %1862 = vst [vmem:[%s2980_s20 + $0x2d0] sm:$0xff] %v2269_v7  ;;  %v2175_v12 = vpack.c.bf16 %v560_v10, %v558_v8  ;;  %v2271_v13 = vpack.c.bf16 %v800_v11, %v798_v9 }
 0x187   : > { %1768 = vst [vmem:[%s2980_s20 + $0x9c] sm:$0xff] %v2175_v12  ;;  %1864 = vst [vmem:[%s2980_s20 + $0x2dc] sm:$0xff] %v2271_v13 }
 0x189   : > { %v564_v14 = vpop.f32.mrb[28].mxu0  ;;  %v804_v15 = vpop.f32.mrb[28].mxu1 }
 0x18a   : > { %v566_v16 = vpop.f32.mrb[29].mxu0  ;;  %v806_v17 = vpop.f32.mrb[29].mxu1 }
 0x18b   : > { %v2177_v18 = vpack.c.bf16 %v566_v16, %v564_v14  ;;  %v2273_v19 = vpack.c.bf16 %v806_v17, %v804_v15  ;;  %v568_v20 = vpop.f32.mrb[30].mxu0  ;;  %v808_v21 = vpop.f32.mrb[30].mxu1 }
 0x18c   : > { %v570_v22 = vpop.f32.mrb[31].mxu0  ;;  %v810_v24 = vpop.f32.mrb[31].mxu1 }
 0x18d   : > { %1770 = vst [vmem:[%s2980_s20 + $0xa8] sm:$0xff] %v2177_v18  ;;  %1866 = vst [vmem:[%s2980_s20 + $0x2e8] sm:$0xff] %v2273_v19  ;;  %v2179_v25 = vpack.c.bf16 %v570_v22, %v568_v20  ;;  %v2275_v26 = vpack.c.bf16 %v810_v24, %v808_v21 }
 0x18f   : > { %1772 = vst [vmem:[%s2980_s20 + $0xb4] sm:$0xff] %v2179_v25  ;;  %1868 = vst [vmem:[%s2980_s20 + $0x2f4] sm:$0xff] %v2275_v26 }
 0x191   : > { %v574_v27 = vpop.f32.mrb[32].mxu0  ;;  %v2336_v28 = vpop.f32.mrb[32].mxu1 }
 0x192   : > { %v2154_v29 = vpack.c.bf16 %v2336_v28, %v2336_v28  ;;  %v576_v30 = vpop.f32.mrb[33].mxu0  ;;  %v847_v32 = vpop.f32.mrb[33].mxu1 }
 0x193   : > { %v2181_v33 = vpack.c.bf16 %v576_v30, %v574_v27  ;;  %v2150_v34 = vpack.c.bf16 %v847_v32, %v847_v32  ;;  %v578_v35 = vpop.f32.mrb[34].mxu0  ;;  %v2337_v36 = vpop.f32.mrb[34].mxu1 }
 0x194   : > { %1747 = vst [vmem:[%s2980_s20 + $0x20] sm:$0xf] %v2154_v29  ;;  %v2156_v37 = vpack.c.bf16 %v2337_v36, %v2337_v36  ;;  %v580_v38 = vpop.f32.mrb[35].mxu0  ;;  %v850_v40 = vpop.f32.mrb[35].mxu1 }
 0x195   : > { %1774 = vst [vmem:[%s2980_s20 + $0xc0] sm:$0xff] %v2181_v33  ;;  %1743 = vst [vmem:[%s2980_s20 + $0x8] sm:$0xf] %v2150_v34  ;;  %v2183_v41 = vpack.c.bf16 %v580_v38, %v578_v35  ;;  %v2152_v42 = vpack.c.bf16 %v850_v40, %v850_v40 }
 0x196   : > { %1749 = vst [vmem:[%s2980_s20 + $0x2c] sm:$0xf] %v2156_v37 }
 0x197   : > { %1776 = vst [vmem:[%s2980_s20 + $0xcc] sm:$0xff] %v2183_v41  ;;  %1745 = vst [vmem:[%s2980_s20 + $0x14] sm:$0xf] %v2152_v42 }
 0x199   : > { %v584_v43 = vpop.f32.mrb[36].mxu0  ;;  %v2340_v44 = vpop.f32.mrb[36].mxu1 }
 0x19a   : > { %v2162_v45 = vpack.c.bf16 %v2340_v44, %v2340_v44  ;;  %v586_v46 = vpop.f32.mrb[37].mxu0  ;;  %v863_v48 = vpop.f32.mrb[37].mxu1 }
 0x19b   : > { %v2185_v49 = vpack.c.bf16 %v586_v46, %v584_v43  ;;  %v2158_v50 = vpack.c.bf16 %v863_v48, %v863_v48  ;;  %v588_v51 = vpop.f32.mrb[38].mxu0  ;;  %v2341_v52 = vpop.f32.mrb[38].mxu1 }
 0x19c   : > { %1755 = vst [vmem:[%s2980_s20 + $0x50] sm:$0xf] %v2162_v45  ;;  %v2164_v53 = vpack.c.bf16 %v2341_v52, %v2341_v52  ;;  %v590_v55 = vpop.f32.mrb[39].mxu0  ;;  %v866_v56 = vpop.f32.mrb[39].mxu1 }
 0x19d   : > { %1778 = vst [vmem:[%s2980_s20 + $0xd8] sm:$0xff] %v2185_v49  ;;  %1751 = vst [vmem:[%s2980_s20 + $0x38] sm:$0xf] %v2158_v50  ;;  %v2187_v57 = vpack.c.bf16 %v590_v55, %v588_v51  ;;  %v2160_v58 = vpack.c.bf16 %v866_v56, %v866_v56 }
 0x19e   : > { %1757 = vst [vmem:[%s2980_s20 + $0x5c] sm:$0xf] %v2164_v53 }
 0x19f   : > { %1780 = vst [vmem:[%s2980_s20 + $0xe4] sm:$0xff] %v2187_v57  ;;  %1753 = vst [vmem:[%s2980_s20 + $0x44] sm:$0xf] %v2160_v58 }
 0x1a1   : > { %v594_v59 = vpop.f32.mrb[40].mxu0  ;;  %v2344_v61 = vpop.f32.mrb[40].mxu1 }
 0x1a2   : > { %v2170_v62 = vpack.c.bf16 %v2344_v61, %v2344_v61  ;;  %v596_v63 = vpop.f32.mrb[41].mxu0  ;;  %v879_v23 = vpop.f32.mrb[41].mxu1 }
 0x1a3   : > { %v2189_v31 = vpack.c.bf16 %v596_v63, %v594_v59  ;;  %v2166_v39 = vpack.c.bf16 %v879_v23, %v879_v23  ;;  %v598_v1 = vpop.f32.mrb[42].mxu0  ;;  %v2345_v47 = vpop.f32.mrb[42].mxu1 }
 0x1a4   : > { %1763 = vst [vmem:[%s2980_s20 + $0x80] sm:$0xf] %v2170_v62  ;;  %v2172_v2 = vpack.c.bf16 %v2345_v47, %v2345_v47  ;;  %v600_v4 = vpop.f32.mrb[43].mxu0  ;;  %v882_v5 = vpop.f32.mrb[43].mxu1 }
 0x1a5   : > { %1782 = vst [vmem:[%s2980_s20 + $0xf0] sm:$0xff] %v2189_v31  ;;  %1759 = vst [vmem:[%s2980_s20 + $0x68] sm:$0xf] %v2166_v39  ;;  %v2191_v54 = vpack.c.bf16 %v600_v4, %v598_v1  ;;  %v2168_v6 = vpack.c.bf16 %v882_v5, %v882_v5 }
 0x1a6   : > { %1765 = vst [vmem:[%s2980_s20 + $0x8c] sm:$0xf] %v2172_v2 }
 0x1a7   : > { %1784 = vst [vmem:[%s2980_s20 + $0xfc] sm:$0xff] %v2191_v54  ;;  %1761 = vst [vmem:[%s2980_s20 + $0x74] sm:$0xf] %v2168_v6 }
 0x1a9   : > { %v604_v0 = vpop.f32.mrb[44].mxu0  ;;  %v2348_v60 = vpop.f32.mrb[44].mxu1 }
 0x1aa   : > { %v2178_v3 = vpack.c.bf16 %v2348_v60, %v2348_v60  ;;  %v606_v7 = vpop.f32.mrb[45].mxu0  ;;  %v895_v8 = vpop.f32.mrb[45].mxu1 }
 0x1ab   : > { %v2193_v9 = vpack.c.bf16 %v606_v7, %v604_v0  ;;  %v2174_v10 = vpack.c.bf16 %v895_v8, %v895_v8  ;;  %v608_v11 = vpop.f32.mrb[46].mxu0  ;;  %v2349_v12 = vpop.f32.mrb[46].mxu1 }
 0x1ac   : > { %1771 = vst [vmem:[%s2980_s20 + $0xb0] sm:$0xf] %v2178_v3  ;;  %v2180_v13 = vpack.c.bf16 %v2349_v12, %v2349_v12  ;;  %v610_v14 = vpop.f32.mrb[47].mxu0  ;;  %v898_v15 = vpop.f32.mrb[47].mxu1 }
 0x1ad   : > { %1786 = vst [vmem:[%s2980_s20 + $0x108] sm:$0xff] %v2193_v9  ;;  %1767 = vst [vmem:[%s2980_s20 + $0x98] sm:$0xf] %v2174_v10  ;;  %v2195_v16 = vpack.c.bf16 %v610_v14, %v608_v11  ;;  %v2176_v17 = vpack.c.bf16 %v898_v15, %v898_v15 }
 0x1ae   : > { %1773 = vst [vmem:[%s2980_s20 + $0xbc] sm:$0xf] %v2180_v13 }
 0x1af   : > { %1788 = vst [vmem:[%s2980_s20 + $0x114] sm:$0xff] %v2195_v16  ;;  %1769 = vst [vmem:[%s2980_s20 + $0xa4] sm:$0xf] %v2176_v17 }
 0x1b1   : > { %v614_v18 = vpop.f32.mrb[48].mxu0  ;;  %v2352_v19 = vpop.f32.mrb[48].mxu1 }
 0x1b2   : > { %v2186_v20 = vpack.c.bf16 %v2352_v19, %v2352_v19  ;;  %v616_v21 = vpop.f32.mrb[49].mxu0  ;;  %v911_v22 = vpop.f32.mrb[49].mxu1 }
 0x1b3   : > { %v2197_v24 = vpack.c.bf16 %v616_v21, %v614_v18  ;;  %v2182_v25 = vpack.c.bf16 %v911_v22, %v911_v22  ;;  %v618_v26 = vpop.f32.mrb[50].mxu0  ;;  %v2353_v27 = vpop.f32.mrb[50].mxu1 }
 0x1b4   : > { %1779 = vst [vmem:[%s2980_s20 + $0xe0] sm:$0xf] %v2186_v20  ;;  %v2188_v28 = vpack.c.bf16 %v2353_v27, %v2353_v27  ;;  %v620_v29 = vpop.f32.mrb[51].mxu0  ;;  %v914_v30 = vpop.f32.mrb[51].mxu1 }
 0x1b5   : > { %1790 = vst [vmem:[%s2980_s20 + $0x120] sm:$0xff] %v2197_v24  ;;  %1775 = vst [vmem:[%s2980_s20 + $0xc8] sm:$0xf] %v2182_v25  ;;  %v2199_v32 = vpack.c.bf16 %v620_v29, %v618_v26  ;;  %v2184_v33 = vpack.c.bf16 %v914_v30, %v914_v30 }
 0x1b6   : > { %1781 = vst [vmem:[%s2980_s20 + $0xec] sm:$0xf] %v2188_v28 }
 0x1b7   : > { %1792 = vst [vmem:[%s2980_s20 + $0x12c] sm:$0xff] %v2199_v32  ;;  %1777 = vst [vmem:[%s2980_s20 + $0xd4] sm:$0xf] %v2184_v33 }
 0x1b9   : > { %v624_v34 = vpop.f32.mrb[52].mxu0  ;;  %v2356_v35 = vpop.f32.mrb[52].mxu1 }
 0x1ba   : > { %v2194_v36 = vpack.c.bf16 %v2356_v35, %v2356_v35  ;;  %v626_v37 = vpop.f32.mrb[53].mxu0  ;;  %v927_v38 = vpop.f32.mrb[53].mxu1 }
 0x1bb   : > { %v2201_v40 = vpack.c.bf16 %v626_v37, %v624_v34  ;;  %v2190_v41 = vpack.c.bf16 %v927_v38, %v927_v38  ;;  %v628_v42 = vpop.f32.mrb[54].mxu0  ;;  %v2357_v43 = vpop.f32.mrb[54].mxu1 }
 0x1bc   : > { %1787 = vst [vmem:[%s2980_s20 + $0x110] sm:$0xf] %v2194_v36  ;;  %v2196_v44 = vpack.c.bf16 %v2357_v43, %v2357_v43  ;;  %v630_v45 = vpop.f32.mrb[55].mxu0  ;;  %v930_v46 = vpop.f32.mrb[55].mxu1 }
 0x1bd   : > { %1794 = vst [vmem:[%s2980_s20 + $0x138] sm:$0xff] %v2201_v40  ;;  %1783 = vst [vmem:[%s2980_s20 + $0xf8] sm:$0xf] %v2190_v41  ;;  %v2203_v48 = vpack.c.bf16 %v630_v45, %v628_v42  ;;  %v2192_v49 = vpack.c.bf16 %v930_v46, %v930_v46 }
 0x1be   : > { %1789 = vst [vmem:[%s2980_s20 + $0x11c] sm:$0xf] %v2196_v44 }
 0x1bf   : > { %1796 = vst [vmem:[%s2980_s20 + $0x144] sm:$0xff] %v2203_v48  ;;  %1785 = vst [vmem:[%s2980_s20 + $0x104] sm:$0xf] %v2192_v49 }
 0x1c1   : > { %v634_v50 = vpop.f32.mrb[56].mxu0  ;;  %v2360_v51 = vpop.f32.mrb[56].mxu1 }
 0x1c2   : > { %v2202_v52 = vpack.c.bf16 %v2360_v51, %v2360_v51  ;;  %v636_v53 = vpop.f32.mrb[57].mxu0  ;;  %v943_v55 = vpop.f32.mrb[57].mxu1 }
 0x1c3   : > { %v2205_v56 = vpack.c.bf16 %v636_v53, %v634_v50  ;;  %v2198_v57 = vpack.c.bf16 %v943_v55, %v943_v55  ;;  %v638_v58 = vpop.f32.mrb[58].mxu0  ;;  %v2361_v59 = vpop.f32.mrb[58].mxu1 }
 0x1c4   : > { %1795 = vst [vmem:[%s2980_s20 + $0x140] sm:$0xf] %v2202_v52  ;;  %v2204_v61 = vpack.c.bf16 %v2361_v59, %v2361_v59  ;;  %v640_v62 = vpop.f32.mrb[59].mxu0  ;;  %v946_v63 = vpop.f32.mrb[59].mxu1 }
 0x1c5   : > { %1798 = vst [vmem:[%s2980_s20 + $0x150] sm:$0xff] %v2205_v56  ;;  %1791 = vst [vmem:[%s2980_s20 + $0x128] sm:$0xf] %v2198_v57  ;;  %v2207_v23 = vpack.c.bf16 %v640_v62, %v638_v58  ;;  %v2200_v31 = vpack.c.bf16 %v946_v63, %v946_v63 }
 0x1c6   : > { %1797 = vst [vmem:[%s2980_s20 + $0x14c] sm:$0xf] %v2204_v61 }
 0x1c7   : > { %1800 = vst [vmem:[%s2980_s20 + $0x15c] sm:$0xff] %v2207_v23  ;;  %1793 = vst [vmem:[%s2980_s20 + $0x134] sm:$0xf] %v2200_v31 }
 0x1c9   : > { %v644_v39 = vpop.f32.mrb[60].mxu0  ;;  %v2364_v1 = vpop.f32.mrb[60].mxu1 }
 0x1ca   : > { %v2210_v47 = vpack.c.bf16 %v2364_v1, %v2364_v1  ;;  %v646_v2 = vpop.f32.mrb[61].mxu0  ;;  %v959_v4 = vpop.f32.mrb[61].mxu1 }
 0x1cb   : > { %v2209_v5 = vpack.c.bf16 %v646_v2, %v644_v39  ;;  %v2206_v54 = vpack.c.bf16 %v959_v4, %v959_v4  ;;  %v648_v6 = vpop.f32.mrb[62].mxu0  ;;  %v2365_v0 = vpop.f32.mrb[62].mxu1 }
 0x1cc   : > { %1803 = vst [vmem:[%s2980_s20 + $0x170] sm:$0xf] %v2210_v47  ;;  %v2212_v60 = vpack.c.bf16 %v2365_v0, %v2365_v0  ;;  %v650_v3 = vpop.f32.mrb[63].mxu0  ;;  %v962_v7 = vpop.f32.mrb[63].mxu1 }
 0x1cd   : > { %1802 = vst [vmem:[%s2980_s20 + $0x168] sm:$0xff] %v2209_v5  ;;  %1799 = vst [vmem:[%s2980_s20 + $0x158] sm:$0xf] %v2206_v54  ;;  %v2211_v8 = vpack.c.bf16 %v650_v3, %v648_v6  ;;  %v2208_v9 = vpack.c.bf16 %v962_v7, %v962_v7 }
 0x1ce   : > { %1805 = vst [vmem:[%s2980_s20 + $0x17c] sm:$0xf] %v2212_v60 }
 0x1cf   : > { %1804 = vst [vmem:[%s2980_s20 + $0x174] sm:$0xff] %v2211_v8  ;;  %1801 = vst [vmem:[%s2980_s20 + $0x164] sm:$0xf] %v2208_v9 }
 0x1d1   : > { %v654_v10 = vpop.f32.mrb[64].mxu0  ;;  %v2368_v11 = vpop.f32.mrb[64].mxu1 }
 0x1d2   : > { %v2218_v12 = vpack.c.bf16 %v2368_v11, %v2368_v11  ;;  %v656_v13 = vpop.f32.mrb[65].mxu0  ;;  %v975_v14 = vpop.f32.mrb[65].mxu1 }
 0x1d3   : > { %v2213_v15 = vpack.c.bf16 %v656_v13, %v654_v10  ;;  %v2214_v16 = vpack.c.bf16 %v975_v14, %v975_v14  ;;  %v658_v17 = vpop.f32.mrb[66].mxu0  ;;  %v2369_v18 = vpop.f32.mrb[66].mxu1 }
 0x1d4   : > { %1811 = vst [vmem:[%s2980_s20 + $0x1a0] sm:$0xf] %v2218_v12  ;;  %v2220_v19 = vpack.c.bf16 %v2369_v18, %v2369_v18  ;;  %v660_v20 = vpop.f32.mrb[67].mxu0  ;;  %v978_v21 = vpop.f32.mrb[67].mxu1 }
 0x1d5   : > { %1806 = vst [vmem:[%s2980_s20 + $0x180] sm:$0xff] %v2213_v15  ;;  %1807 = vst [vmem:[%s2980_s20 + $0x188] sm:$0xf] %v2214_v16  ;;  %v2215_v22 = vpack.c.bf16 %v660_v20, %v658_v17  ;;  %v2216_v24 = vpack.c.bf16 %v978_v21, %v978_v21 }
 0x1d6   : > { %1813 = vst [vmem:[%s2980_s20 + $0x1ac] sm:$0xf] %v2220_v19 }
 0x1d7   : > { %1808 = vst [vmem:[%s2980_s20 + $0x18c] sm:$0xff] %v2215_v22  ;;  %1809 = vst [vmem:[%s2980_s20 + $0x194] sm:$0xf] %v2216_v24 }
 0x1d9   : > { %v664_v25 = vpop.f32.mrb[68].mxu0  ;;  %v2372_v26 = vpop.f32.mrb[68].mxu1 }
 0x1da   : > { %v2226_v27 = vpack.c.bf16 %v2372_v26, %v2372_v26  ;;  %v666_v28 = vpop.f32.mrb[69].mxu0  ;;  %v991_v29 = vpop.f32.mrb[69].mxu1 }
 0x1db   : > { %v2217_v30 = vpack.c.bf16 %v666_v28, %v664_v25  ;;  %v2222_v32 = vpack.c.bf16 %v991_v29, %v991_v29  ;;  %v668_v33 = vpop.f32.mrb[70].mxu0  ;;  %v2373_v34 = vpop.f32.mrb[70].mxu1 }
 0x1dc   : > { %1819 = vst [vmem:[%s2980_s20 + $0x1d0] sm:$0xf] %v2226_v27  ;;  %v2228_v35 = vpack.c.bf16 %v2373_v34, %v2373_v34  ;;  %v670_v36 = vpop.f32.mrb[71].mxu0  ;;  %v994_v37 = vpop.f32.mrb[71].mxu1 }
 0x1dd   : > { %1810 = vst [vmem:[%s2980_s20 + $0x198] sm:$0xff] %v2217_v30  ;;  %1815 = vst [vmem:[%s2980_s20 + $0x1b8] sm:$0xf] %v2222_v32  ;;  %v2219_v38 = vpack.c.bf16 %v670_v36, %v668_v33  ;;  %v2224_v40 = vpack.c.bf16 %v994_v37, %v994_v37 }
 0x1de   : > { %1821 = vst [vmem:[%s2980_s20 + $0x1dc] sm:$0xf] %v2228_v35 }
 0x1df   : > { %1812 = vst [vmem:[%s2980_s20 + $0x1a4] sm:$0xff] %v2219_v38  ;;  %1817 = vst [vmem:[%s2980_s20 + $0x1c4] sm:$0xf] %v2224_v40 }
 0x1e1   : > { %v674_v41 = vpop.f32.mrb[72].mxu0  ;;  %v2376_v42 = vpop.f32.mrb[72].mxu1 }
 0x1e2   : > { %v2234_v43 = vpack.c.bf16 %v2376_v42, %v2376_v42  ;;  %v676_v44 = vpop.f32.mrb[73].mxu0  ;;  %v1007_v45 = vpop.f32.mrb[73].mxu1 }
 0x1e3   : > { %v2221_v46 = vpack.c.bf16 %v676_v44, %v674_v41  ;;  %v2230_v48 = vpack.c.bf16 %v1007_v45, %v1007_v45  ;;  %v678_v49 = vpop.f32.mrb[74].mxu0  ;;  %v2377_v50 = vpop.f32.mrb[74].mxu1 }
 0x1e4   : > { %1827 = vst [vmem:[%s2980_s20 + $0x200] sm:$0xf] %v2234_v43  ;;  %v2236_v51 = vpack.c.bf16 %v2377_v50, %v2377_v50  ;;  %v680_v52 = vpop.f32.mrb[75].mxu0  ;;  %v1010_v53 = vpop.f32.mrb[75].mxu1 }
 0x1e5   : > { %1814 = vst [vmem:[%s2980_s20 + $0x1b0] sm:$0xff] %v2221_v46  ;;  %1823 = vst [vmem:[%s2980_s20 + $0x1e8] sm:$0xf] %v2230_v48  ;;  %v2223_v55 = vpack.c.bf16 %v680_v52, %v678_v49  ;;  %v2232_v56 = vpack.c.bf16 %v1010_v53, %v1010_v53 }
 0x1e6   : > { %1829 = vst [vmem:[%s2980_s20 + $0x20c] sm:$0xf] %v2236_v51 }
 0x1e7   : > { %1816 = vst [vmem:[%s2980_s20 + $0x1bc] sm:$0xff] %v2223_v55  ;;  %1825 = vst [vmem:[%s2980_s20 + $0x1f4] sm:$0xf] %v2232_v56 }
 0x1e9   : > { %v684_v57 = vpop.f32.mrb[76].mxu0  ;;  %v2380_v58 = vpop.f32.mrb[76].mxu1 }
 0x1ea   : > { %v2242_v59 = vpack.c.bf16 %v2380_v58, %v2380_v58  ;;  %v686_v61 = vpop.f32.mrb[77].mxu0  ;;  %v1023_v62 = vpop.f32.mrb[77].mxu1 }
 0x1eb   : > { %v2225_v63 = vpack.c.bf16 %v686_v61, %v684_v57  ;;  %v2238_v23 = vpack.c.bf16 %v1023_v62, %v1023_v62  ;;  %v688_v31 = vpop.f32.mrb[78].mxu0  ;;  %v2381_v39 = vpop.f32.mrb[78].mxu1 }
 0x1ec   : > { %1835 = vst [vmem:[%s2980_s20 + $0x230] sm:$0xf] %v2242_v59  ;;  %v2244_v1 = vpack.c.bf16 %v2381_v39, %v2381_v39  ;;  %v690_v47 = vpop.f32.mrb[79].mxu0  ;;  %v1026_v2 = vpop.f32.mrb[79].mxu1 }
 0x1ed   : > { %1818 = vst [vmem:[%s2980_s20 + $0x1c8] sm:$0xff] %v2225_v63  ;;  %1831 = vst [vmem:[%s2980_s20 + $0x218] sm:$0xf] %v2238_v23  ;;  %v2227_v4 = vpack.c.bf16 %v690_v47, %v688_v31  ;;  %v2240_v5 = vpack.c.bf16 %v1026_v2, %v1026_v2 }
 0x1ee   : > { %1837 = vst [vmem:[%s2980_s20 + $0x23c] sm:$0xf] %v2244_v1 }
 0x1ef   : > { %1820 = vst [vmem:[%s2980_s20 + $0x1d4] sm:$0xff] %v2227_v4  ;;  %1833 = vst [vmem:[%s2980_s20 + $0x224] sm:$0xf] %v2240_v5 }
 0x1f1   : > { %v694_v54 = vpop.f32.mrb[80].mxu0  ;;  %v2384_v6 = vpop.f32.mrb[80].mxu1 }
 0x1f2   : > { %v2250_v0 = vpack.c.bf16 %v2384_v6, %v2384_v6  ;;  %v696_v60 = vpop.f32.mrb[81].mxu0  ;;  %v1039_v3 = vpop.f32.mrb[81].mxu1 }
 0x1f3   : > { %v2229_v7 = vpack.c.bf16 %v696_v60, %v694_v54  ;;  %v2246_v8 = vpack.c.bf16 %v1039_v3, %v1039_v3  ;;  %v698_v9 = vpop.f32.mrb[82].mxu0  ;;  %v2385_v10 = vpop.f32.mrb[82].mxu1 }
 0x1f4   : > { %1843 = vst [vmem:[%s2980_s20 + $0x260] sm:$0xf] %v2250_v0  ;;  %v2252_v11 = vpack.c.bf16 %v2385_v10, %v2385_v10  ;;  %v700_v12 = vpop.f32.mrb[83].mxu0  ;;  %v1042_v13 = vpop.f32.mrb[83].mxu1 }
 0x1f5   : > { %1822 = vst [vmem:[%s2980_s20 + $0x1e0] sm:$0xff] %v2229_v7  ;;  %1839 = vst [vmem:[%s2980_s20 + $0x248] sm:$0xf] %v2246_v8  ;;  %v2231_v14 = vpack.c.bf16 %v700_v12, %v698_v9  ;;  %v2248_v15 = vpack.c.bf16 %v1042_v13, %v1042_v13 }
 0x1f6   : > { %1845 = vst [vmem:[%s2980_s20 + $0x26c] sm:$0xf] %v2252_v11 }
 0x1f7   : > { %1824 = vst [vmem:[%s2980_s20 + $0x1ec] sm:$0xff] %v2231_v14  ;;  %1841 = vst [vmem:[%s2980_s20 + $0x254] sm:$0xf] %v2248_v15 }
 0x1f9   : > { %v704_v16 = vpop.f32.mrb[84].mxu0  ;;  %v2388_v17 = vpop.f32.mrb[84].mxu1 }
 0x1fa   : > { %v2258_v18 = vpack.c.bf16 %v2388_v17, %v2388_v17  ;;  %v706_v19 = vpop.f32.mrb[85].mxu0  ;;  %v1055_v20 = vpop.f32.mrb[85].mxu1 }
 0x1fb   : > { %v2233_v21 = vpack.c.bf16 %v706_v19, %v704_v16  ;;  %v2254_v22 = vpack.c.bf16 %v1055_v20, %v1055_v20  ;;  %v708_v24 = vpop.f32.mrb[86].mxu0  ;;  %v2389_v25 = vpop.f32.mrb[86].mxu1 }
 0x1fc   : > { %1851 = vst [vmem:[%s2980_s20 + $0x290] sm:$0xf] %v2258_v18  ;;  %v2260_v26 = vpack.c.bf16 %v2389_v25, %v2389_v25  ;;  %v710_v27 = vpop.f32.mrb[87].mxu0  ;;  %v1058_v28 = vpop.f32.mrb[87].mxu1 }
 0x1fd   : > { %1826 = vst [vmem:[%s2980_s20 + $0x1f8] sm:$0xff] %v2233_v21  ;;  %1847 = vst [vmem:[%s2980_s20 + $0x278] sm:$0xf] %v2254_v22  ;;  %v2235_v29 = vpack.c.bf16 %v710_v27, %v708_v24  ;;  %v2256_v30 = vpack.c.bf16 %v1058_v28, %v1058_v28 }
 0x1fe   : > { %1853 = vst [vmem:[%s2980_s20 + $0x29c] sm:$0xf] %v2260_v26 }
 0x1ff   : > { %1828 = vst [vmem:[%s2980_s20 + $0x204] sm:$0xff] %v2235_v29  ;;  %1849 = vst [vmem:[%s2980_s20 + $0x284] sm:$0xf] %v2256_v30 }
 0x201   : > { %v714_v32 = vpop.f32.mrb[88].mxu0  ;;  %v2392_v33 = vpop.f32.mrb[88].mxu1 }
 0x202   : > { %v2266_v34 = vpack.c.bf16 %v2392_v33, %v2392_v33  ;;  %v716_v35 = vpop.f32.mrb[89].mxu0  ;;  %v1071_v36 = vpop.f32.mrb[89].mxu1 }
 0x203   : > { %v2237_v37 = vpack.c.bf16 %v716_v35, %v714_v32  ;;  %v2262_v38 = vpack.c.bf16 %v1071_v36, %v1071_v36  ;;  %v718_v40 = vpop.f32.mrb[90].mxu0  ;;  %v2393_v41 = vpop.f32.mrb[90].mxu1 }
 0x204   : > { %1859 = vst [vmem:[%s2980_s20 + $0x2c0] sm:$0xf] %v2266_v34  ;;  %v2268_v42 = vpack.c.bf16 %v2393_v41, %v2393_v41  ;;  %v720_v43 = vpop.f32.mrb[91].mxu0  ;;  %v1074_v44 = vpop.f32.mrb[91].mxu1 }
 0x205   : > { %1830 = vst [vmem:[%s2980_s20 + $0x210] sm:$0xff] %v2237_v37  ;;  %1855 = vst [vmem:[%s2980_s20 + $0x2a8] sm:$0xf] %v2262_v38  ;;  %v2239_v45 = vpack.c.bf16 %v720_v43, %v718_v40  ;;  %v2264_v46 = vpack.c.bf16 %v1074_v44, %v1074_v44 }
 0x206   : > { %1861 = vst [vmem:[%s2980_s20 + $0x2cc] sm:$0xf] %v2268_v42 }
 0x207   : > { %1832 = vst [vmem:[%s2980_s20 + $0x21c] sm:$0xff] %v2239_v45  ;;  %1857 = vst [vmem:[%s2980_s20 + $0x2b4] sm:$0xf] %v2264_v46 }
 0x209   : > { %v724_v48 = vpop.f32.mrb[92].mxu0  ;;  %v2396_v49 = vpop.f32.mrb[92].mxu1 }
 0x20a   : > { %v2274_v50 = vpack.c.bf16 %v2396_v49, %v2396_v49  ;;  %v726_v51 = vpop.f32.mrb[93].mxu0  ;;  %v1087_v52 = vpop.f32.mrb[93].mxu1 }
 0x20b   : > { %v2241_v53 = vpack.c.bf16 %v726_v51, %v724_v48  ;;  %v2270_v55 = vpack.c.bf16 %v1087_v52, %v1087_v52  ;;  %v728_v56 = vpop.f32.mrb[94].mxu0  ;;  %v2397_v57 = vpop.f32.mrb[94].mxu1 }
 0x20c   : > { %1867 = vst [vmem:[%s2980_s20 + $0x2f0] sm:$0xf] %v2274_v50  ;;  %v2276_v58 = vpack.c.bf16 %v2397_v57, %v2397_v57  ;;  %v730_v59 = vpop.f32.mrb[95].mxu0  ;;  %v1090_v61 = vpop.f32.mrb[95].mxu1 }
 0x20d   : > { %1834 = vst [vmem:[%s2980_s20 + $0x228] sm:$0xff] %v2241_v53  ;;  %1863 = vst [vmem:[%s2980_s20 + $0x2d8] sm:$0xf] %v2270_v55  ;;  %v2243_v62 = vpack.c.bf16 %v730_v59, %v728_v56  ;;  %v2272_v63 = vpack.c.bf16 %v1090_v61, %v1090_v61 }
 0x20e   : > { %1869 = vst [vmem:[%s2980_s20 + $0x2fc] sm:$0xf] %v2276_v58 }
 0x20f   : > { %1836 = vst [vmem:[%s2980_s20 + $0x234] sm:$0xff] %v2243_v62  ;;  %1865 = vst [vmem:[%s2980_s20 + $0x2e4] sm:$0xf] %v2272_v63 }
 0x210   : > { %2602 = shalt.err (!%p2599_p8)
}
 0x211   : > { %s2603_s25 = scalar_lea.hbm %s3109_s12, 12288  ;;  %s2607_s4 = scalar_lea.hbm %s3168_s2, 24576 }
 0x212   : > { %p2604_p0 = scmp.ne.s32.totalorder %s3109_s12, %s2603_s25  ;;  %p2608_p12 = scmp.lt.u32.totalorder %s3109_s12, %s3168_s2 }
 0x213   : > { %p2609_p2 = scmp.lt.u32.totalorder %s2607_s4, %s2603_s25  ;;  %p2611_p10 = scmp.lt.u32.totalorder %s2603_s25, %s3109_s12 }
 0x214   : > { %p2605_p4 = pnand %p2604_p0, %p3189_p11 }
 0x215   : > { %p2610_p9 = por %p2609_p2, %p2608_p12 }
 0x216   : > { %p2606_p6 = pneg %p2605_p4 }
 0x217   : > { %p2612_p13 = por %p2611_p10, %p2610_p9 }
 0x219   : > { %p2613_p5 = pnand %p2612_p13, %p2606_p6 }
 0x21b   : > { %2616 = shalt.err (!%p2613_p5)
}
 0x21c   : > { %s2686_s18 = smov 192   ;;  %s2687_s20 = smov 384  }
 0x21d   : > { %s2688_s23 = smov 12  }
 0x21e   : > { %2423 = dma.vmem_to_hbm [thread:$0]  (%p3189_p11), %s3112_s27, 12288, %s3109_s12, %s1871_s16, %s2686_s18, %s2687_s20, %s2688_s23  }
 0x21f PF: > { %s1902_s15 = sand.u32 1, %s2655_s9   ;;  %p3190_p1 = scmp.ne.s32.totalorder %s3179_s22, 0 }
 0x220   : > { %p3191_p3 = scmp.ge.s32.totalorder %s2675_s14, 2  ;;  %s1903_s26 = scalar_lea.sflag [#allocation4], %s1902_s15 }
 0x222   : > { %p2434_p7 = pnand %p3191_p3, %p3190_p1 }
 0x224   : > { %2650 = dma.done.wait (!%p2434_p7), %s1903_s26, 12288  }
 0x225   : > { %2652 = vsyncadd (!%p2434_p7), %s1903_s26, 4294955008  ;;  %s19_s14 = sadd.s32 1, %s2675_s14   ;;  %s3192_s9 = smov %s2659_s10 }
 0x226   : > { %p16_p8 = scmp.ge.s32.totalorder %s19_s14, 4   ;;  %s3193_s10 = smov %s2663_s11 }
 0x227   : > { %s3194_s11 = smov %s2830_s29  ;;  %s3195_s12 = smov %s2671_s13 }
 0x228   : > { %s3196_s13 = smov %s3198_s28  ;;  %18 = sbr.rel (!%p16_p8) target bundleno = 7 (0x7), region = 79 }
 0x22f   :  { %1908 = vsyncpa [#allocation3], 1 }
 0x230   :  { %1910 = vsyncpa [#allocation3 + $0x1], 1 }
 0x231   :  { %1911 = vsyncpa [#allocation6], 1 }
 0x232   :  { %1913 = vsyncpa [#allocation6 + $0x1], 1 }
 0x233   :  { %1914 = vsyncpa [#allocation4], 1 }
 0x234   :  { %1916 = vsyncpa [#allocation4 + $0x1], 1 }

</bundles_post_ra>
